<compile_context>
chip_gen: v7x
topology: tpu7x:2x2x1
jax: 0.10.0
libtpu: 0.0.40
codegen_flags: <defaults>
</compile_context>

<pallas_src>
import functools
import math

import jax
import jax.numpy as jnp
from jax import lax
from jax.experimental import pallas as pl
from jax.experimental.pallas import tpu as pltpu

EPS = 1e-6


# ---------------------------------------------------------------------------
# LayerNorm helpers (mwptoolkit semantics: unbiased std, eps added to std)
# ---------------------------------------------------------------------------
def _layernorm_kernel_math(x, a, b):
    """In-kernel LayerNorm: a*(x-mean)/(std+eps)+b, std unbiased (ddof=1)."""
    d = x.shape[-1]
    mean = jnp.mean(x, axis=-1, keepdims=True)
    var = jnp.sum((x - mean) ** 2, axis=-1, keepdims=True) * (1.0 / (d - 1))
    inv = pl.reciprocal(jnp.sqrt(var) + EPS, approx=True)
    return a * (x - mean) * inv + b


def _layernorm_ref(x, a, b):
    d = x.shape[-1]
    mean = jnp.mean(x, axis=-1, keepdims=True)
    var = jnp.sum((x - mean) ** 2, axis=-1, keepdims=True) / (d - 1)
    std = jnp.sqrt(var)
    return a * (x - mean) / (std + EPS) + b


# ---------------------------------------------------------------------------
# Fused Pallas kernel: all layers + final LayerNorm, x resident in VMEM
# ---------------------------------------------------------------------------
def fused_encoder_kernel(x_ref, bias_ref,
                         ln1a_ref, ln1b_ref, wqkv_ref, bqkv_ref,
                         wo_ref, bo_ref,
                         ln2a_ref, ln2b_ref, w1_ref, b1_ref, w2_ref, b2_ref,
                         fina_ref, finb_ref,
                         o_ref, x_state, *, num_heads):
    """Grid = (batch, layer). One encoder layer per step; final LN at last step."""
    l = pl.program_id(1)

    @pl.when(l == 0)
    def _():
        x_state[...] = x_ref[0]          # load x once per batch element

    x = x_state[...]                     # [S, D], VMEM-resident across layers
    S, D = x.shape
    dk = D // num_heads
    scale = 1.0 / math.sqrt(dk)

    # ---- sublayer 1: x + MHA(LN1(x)) with additive mask bias --------------
    xn = _layernorm_kernel_math(x, ln1a_ref[0], ln1b_ref[0])
    qkv = (jnp.dot(xn, wqkv_ref[0], preferred_element_type=jnp.float32)
           + bqkv_ref[0])                # [S, 3D] — single fused QKV matmul
    q = qkv[:, 0 * D:1 * D]
    k = qkv[:, 1 * D:2 * D]
    v = qkv[:, 2 * D:3 * D]

    heads = []
    for h in range(num_heads):           # static unroll; H is small
        lo = h * dk
        q_h = q[:, lo:lo + dk]
        k_h = k[:, lo:lo + dk]
        v_h = v[:, lo:lo + dk]
        # q_h @ k_h.T without an explicit transpose (contract last dims)
        s = lax.dot_general(q_h, k_h, (((1,), (1,)), ((), ())),
                            preferred_element_type=jnp.float32) * scale
        s = s + bias_ref[0, h]           # additive bias: 0 attend, -1e9 masked
        m = jnp.max(s, axis=-1, keepdims=True)
        p = jnp.exp(s - m)
        p = p * pl.reciprocal(jnp.sum(p, axis=-1, keepdims=True), approx=True)
        heads.append(jnp.dot(p, v_h, preferred_element_type=jnp.float32))
    attn = jnp.concatenate(heads, axis=-1)                  # [S, D]
    y = x + (jnp.dot(attn, wo_ref[0], preferred_element_type=jnp.float32)
             + bo_ref[0])                                   # single output proj

    # ---- sublayer 2: y + FFN(LN2(y)) ---------------------------------------
    yn = _layernorm_kernel_math(y, ln2a_ref[0], ln2b_ref[0])
    h1 = jnp.maximum(
        jnp.dot(yn, w1_ref[0], preferred_element_type=jnp.float32) + b1_ref[0],
        0.0)
    z = y + (jnp.dot(h1, w2_ref[0], preferred_element_type=jnp.float32)
             + b2_ref[0])
    x_state[...] = z                     # carry to next layer step

    @pl.when(l == pl.num_programs(1) - 1)
    def _():
        o_ref[0] = _layernorm_kernel_math(z, fina_ref[...], finb_ref[...])


# ---------------------------------------------------------------------------
# Wrapper: pack weights, build additive mask bias, one pallas_call
# ---------------------------------------------------------------------------
def group_att_encoder(x, mask, layer_params, final_a, final_b, num_heads):
    """GroupATTEncoder.forward: stack of layers + final LayerNorm (fused)."""
    B, S, D = x.shape
    H = mask.shape[1]
    N = len(layer_params)
    d_ff = layer_params[0]["w1"].shape[1]

    stack = lambda name: jnp.stack([p[name] for p in layer_params], axis=0)
    w_qkv = jnp.stack(
        [jnp.concatenate([p["wq"], p["wk"], p["wv"]], axis=1)
         for p in layer_params], axis=0)                    # [N, D, 3D]
    b_qkv = jnp.stack(
        [jnp.concatenate([p["bq"], p["bk"], p["bv"]], axis=1)
         for p in layer_params], axis=0)                    # [N, 1, 3D]
    ln1_a, ln1_b = stack("ln1_a"), stack("ln1_b")
    wo, bo = stack("wo"), stack("bo")
    ln2_a, ln2_b = stack("ln2_a"), stack("ln2_b")
    w1, b1 = stack("w1"), stack("b1")
    w2, b2 = stack("w2"), stack("b2")

    # masked_fill(mask==0, -1e9) as an additive bias, computed once.
    bias = jnp.where(mask == 0.0, -1e9, 0.0).astype(jnp.float32)

    def _lspec(*tail):   # per-layer stacked params, indexed by the layer axis
        return pl.BlockSpec((1,) + tail,
                            lambda b, l, _n=len(tail): (l,) + (0,) * _n)

    def _cspec(*shape):  # constant across the whole grid
        return pl.BlockSpec(shape, lambda b, l, _n=len(shape): (0,) * _n)

    kernel = functools.partial(fused_encoder_kernel, num_heads=num_heads)
    return pl.pallas_call(
        kernel,
        out_shape=jax.ShapeDtypeStruct((B, S, D), jnp.float32),
        grid=(B, N),
        in_specs=[
            pl.BlockSpec((1, S, D), lambda b, l: (b, 0, 0)),        # x
            pl.BlockSpec((1, H, S, S), lambda b, l: (b, 0, 0, 0)),  # mask bias
            _lspec(1, D), _lspec(1, D),                             # ln1 a, b
            _lspec(D, 3 * D), _lspec(1, 3 * D),                     # W_qkv, b_qkv
            _lspec(D, D), _lspec(1, D),                             # Wo, bo
            _lspec(1, D), _lspec(1, D),                             # ln2 a, b
            _lspec(D, d_ff), _lspec(1, d_ff),                       # W1, b1
            _lspec(d_ff, D), _lspec(1, D),                          # W2, b2
            _cspec(1, D), _cspec(1, D),                             # final a, b
        ],
        out_specs=pl.BlockSpec((1, S, D), lambda b, l: (b, 0, 0)),
        scratch_shapes=[pltpu.VMEM((S, D), jnp.float32)],           # resident x
        compiler_params=pltpu.CompilerParams(
            dimension_semantics=("parallel", "arbitrary")),
    )(x, bias, ln1_a, ln1_b, w_qkv, b_qkv, wo, bo,
      ln2_a, ln2_b, w1, b1, w2, b2, final_a, final_b)


# ---------------------------------------------------------------------------
# Pure-JAX reference (for correctness check only)
# ---------------------------------------------------------------------------
def reference_forward(x, mask, layer_params, final_a, final_b, num_heads):
    B, S, D = x.shape
    dk = D // num_heads
    for p in layer_params:
        xn = _layernorm_ref(x, p["ln1_a"], p["ln1_b"])
        q = xn @ p["wq"] + p["bq"]
        k = xn @ p["wk"] + p["bk"]
        v = xn @ p["wv"] + p["bv"]
        qh = q.reshape(B, S, num_heads, dk).transpose(0, 2, 1, 3)
        kh = k.reshape(B, S, num_heads, dk).transpose(0, 2, 1, 3)
        vh = v.reshape(B, S, num_heads, dk).transpose(0, 2, 1, 3)
        scores = jnp.einsum("bhqd,bhkd->bhqk", qh, kh) / math.sqrt(dk)
        scores = jnp.where(mask == 0.0, -1e9, scores)
        attn = jax.nn.softmax(scores, axis=-1)
        oh = jnp.einsum("bhqk,bhkd->bhqd", attn, vh)
        o = oh.transpose(0, 2, 1, 3).reshape(B, S, D) @ p["wo"] + p["bo"]
        x = x + o
        yn = _layernorm_ref(x, p["ln2_a"], p["ln2_b"])
        ff = jnp.maximum(yn @ p["w1"] + p["b1"], 0.0) @ p["w2"] + p["b2"]
        x = x + ff
    return _layernorm_ref(x, final_a, final_b)


# ---------------------------------------------------------------------------
# Main
# ---------------------------------------------------------------------------
def make_layer_params(key, D, d_ff):
    ks = jax.random.split(key, 8)
    s = 0.1
    f32 = jnp.float32
    return {
        "ln1_a": jnp.ones((1, D), f32), "ln1_b": jnp.zeros((1, D), f32),
        "wq": s * jax.random.normal(ks[0], (D, D), f32),
        "bq": s * jax.random.normal(ks[1], (1, D), f32),
        "wk": s * jax.random.normal(ks[2], (D, D), f32),
        "bk": jnp.zeros((1, D), f32),
        "wv": s * jax.random.normal(ks[3], (D, D), f32),
        "bv": jnp.zeros((1, D), f32),
        "wo": s * jax.random.normal(ks[4], (D, D), f32),
        "bo": jnp.zeros((1, D), f32),
        "ln2_a": jnp.ones((1, D), f32), "ln2_b": jnp.zeros((1, D), f32),
        "w1": s * jax.random.normal(ks[5], (D, d_ff), f32),
        "b1": s * jax.random.normal(ks[6], (1, d_ff), f32),
        "w2": s * jax.random.normal(ks[7], (d_ff, D), f32),
        "b2": jnp.zeros((1, D), f32),
    }


if __name__ == "__main__":
    B, S, D, H, d_ff, N = 2, 8, 32, 4, 64, 2   # small shapes

    key = jax.random.PRNGKey(0)
    kx, kp = jax.random.split(key)
    x = jax.random.normal(kx, (B, S, D), jnp.float32)

    # Per-head group masks [B, H, S, S] (1 = attend, 0 = masked -> -1e9):
    # head 0: global, head 1: lower-triangular, head 2: band(+/-2), head 3: self+neighbors.
    rows = jnp.arange(S)[:, None]
    cols = jnp.arange(S)[None, :]
    m_global = jnp.ones((S, S), jnp.float32)
    m_tril = (cols <= rows).astype(jnp.float32)
    m_band = (jnp.abs(cols - rows) <= 2).astype(jnp.float32)
    m_near = (jnp.abs(cols - rows) <= 1).astype(jnp.float32)
    mask = jnp.broadcast_to(
        jnp.stack([m_global, m_tril, m_band, m_near], axis=0)[None], (B, H, S, S)
    ).astype(jnp.float32)

    layer_keys = jax.random.split(kp, N)
    layer_params = [make_layer_params(k, D, d_ff) for k in layer_keys]
    final_a = jnp.ones((1, D), jnp.float32)
    final_b = jnp.zeros((1, D), jnp.float32)

    # dropout omitted (eval mode / p=0 semantics)
    out = group_att_encoder(x, mask, layer_params, final_a, final_b, H)
    out = jax.block_until_ready(out)

    ref = reference_forward(x, mask, layer_params, final_a, final_b, H)
    assert out.shape == (B, S, D)
    assert jnp.allclose(out, ref, atol=2e-2, rtol=2e-2), "mismatch vs reference"

    print("KERNEL_OK")
</pallas_src>

<mosaic_0001>
module attributes {stable_mosaic.version = 11 : i64} {
  func.func @fused_encoder_kernel(%arg0: i32, %arg1: i32, %arg2: memref<1x8x32xf32, #tpu.memory_space<vmem>>, %arg3: memref<1x4x8x8xf32, #tpu.memory_space<vmem>>, %arg4: memref<1x1x32xf32, #tpu.memory_space<vmem>>, %arg5: memref<1x1x32xf32, #tpu.memory_space<vmem>>, %arg6: memref<1x32x96xf32, #tpu.memory_space<vmem>>, %arg7: memref<1x1x96xf32, #tpu.memory_space<vmem>>, %arg8: memref<1x32x32xf32, #tpu.memory_space<vmem>>, %arg9: memref<1x1x32xf32, #tpu.memory_space<vmem>>, %arg10: memref<1x1x32xf32, #tpu.memory_space<vmem>>, %arg11: memref<1x1x32xf32, #tpu.memory_space<vmem>>, %arg12: memref<1x32x64xf32, #tpu.memory_space<vmem>>, %arg13: memref<1x1x64xf32, #tpu.memory_space<vmem>>, %arg14: memref<1x64x32xf32, #tpu.memory_space<vmem>>, %arg15: memref<1x1x32xf32, #tpu.memory_space<vmem>>, %arg16: memref<1x32xf32, #tpu.memory_space<vmem>>, %arg17: memref<1x32xf32, #tpu.memory_space<vmem>>, %arg18: memref<1x8x32xf32, #tpu.memory_space<vmem>>, %arg19: memref<8x32xf32, #tpu.memory_space<vmem>>) attributes {dimension_semantics = [#tpu.dimension_semantics<parallel>, #tpu.dimension_semantics<arbitrary>], iteration_bounds = array<i64: 2, 2>, scalar_prefetch = 0 : i64, scratch_operands = 1 : i64, tpu.core_type = #tpu.core_type<tc>, window_params = [{transform_indices = @transform_0, window_bounds = array<i64: 1, 8, 32>}, {transform_indices = @transform_1, window_bounds = array<i64: 1, 4, 8, 8>}, {transform_indices = @transform_2, window_bounds = array<i64: 1, 1, 32>}, {transform_indices = @transform_3, window_bounds = array<i64: 1, 1, 32>}, {transform_indices = @transform_4, window_bounds = array<i64: 1, 32, 96>}, {transform_indices = @transform_5, window_bounds = array<i64: 1, 1, 96>}, {transform_indices = @transform_6, window_bounds = array<i64: 1, 32, 32>}, {transform_indices = @transform_7, window_bounds = array<i64: 1, 1, 32>}, {transform_indices = @transform_8, window_bounds = array<i64: 1, 1, 32>}, {transform_indices = @transform_9, window_bounds = array<i64: 1, 1, 32>}, {transform_indices = @transform_10, window_bounds = array<i64: 1, 32, 64>}, {transform_indices = @transform_11, window_bounds = array<i64: 1, 1, 64>}, {transform_indices = @transform_12, window_bounds = array<i64: 1, 64, 32>}, {transform_indices = @transform_13, window_bounds = array<i64: 1, 1, 32>}, {pipeline_mode = #tpu.pipeline_mode<synchronous>, transform_indices = @transform_14, window_bounds = array<i64: 1, 32>}, {pipeline_mode = #tpu.pipeline_mode<synchronous>, transform_indices = @transform_15, window_bounds = array<i64: 1, 32>}, {transform_indices = @transform_16, window_bounds = array<i64: 1, 8, 32>}]} {
    %c0_i32 = arith.constant 0 : i32
    %0 = arith.cmpi eq, %arg1, %c0_i32 : i32
    %1 = arith.extui %0 : i1 to i32
    %c0_i32_0 = arith.constant 0 : i32
    %2 = arith.cmpi ne, %1, %c0_i32_0 : i32
    scf.if %2 {
      %c0_88 = arith.constant 0 : index
      %c0_89 = arith.constant 0 : index
      %c0_90 = arith.constant 0 : index
      %178 = vector.load %arg2[%c0_88, %c0_89, %c0_90] : memref<1x8x32xf32, #tpu.memory_space<vmem>>, vector<1x8x32xf32>
      %179 = vector.shape_cast %178 : vector<1x8x32xf32> to vector<8x32xf32>
      %c0_91 = arith.constant 0 : index
      %c0_92 = arith.constant 0 : index
      %180 = vector.load %arg19[%c0_91, %c0_92] : memref<8x32xf32, #tpu.memory_space<vmem>>, vector<8x32xf32>
      tpu.vector_store %arg19[%c0_91, %c0_92], %179 {strides = array<i32>} : memref<8x32xf32, #tpu.memory_space<vmem>>, vector<8x32xf32>,
    } else {
    }
    %c0 = arith.constant 0 : index
    %c0_1 = arith.constant 0 : index
    %3 = vector.load %arg19[%c0, %c0_1] : memref<8x32xf32, #tpu.memory_space<vmem>>, vector<8x32xf32>
    %c0_2 = arith.constant 0 : index
    %c0_3 = arith.constant 0 : index
    %c0_4 = arith.constant 0 : index
    %4 = vector.load %arg4[%c0_2, %c0_3, %c0_4] : memref<1x1x32xf32, #tpu.memory_space<vmem>>, vector<1x1x32xf32>
    %5 = vector.shape_cast %4 : vector<1x1x32xf32> to vector<1x32xf32>
    %c0_5 = arith.constant 0 : index
    %c0_6 = arith.constant 0 : index
    %c0_7 = arith.constant 0 : index
    %6 = vector.load %arg5[%c0_5, %c0_6, %c0_7] : memref<1x1x32xf32, #tpu.memory_space<vmem>>, vector<1x1x32xf32>
    %7 = vector.shape_cast %6 : vector<1x1x32xf32> to vector<1x32xf32>
    %cst = arith.constant dense<0.000000e+00> : vector<8xf32>
    %8 = vector.multi_reduction <add>, %3, %cst [1] : vector<8x32xf32> to vector<8xf32>
    %9 = vector.shape_cast %8 : vector<8xf32> to vector<8x1xf32>
    %cst_8 = arith.constant 3.200000e+01 : f32
    %10 = vector.broadcast %cst_8 : f32 to vector<8x1xf32>
    %11 = arith.divf %9, %10 : vector<8x1xf32>
    %12 = vector.broadcast %11 : vector<8x1xf32> to vector<8x32xf32>
    %13 = arith.subf %3, %12 : vector<8x32xf32>
    %14 = arith.mulf %13, %13 : vector<8x32xf32>
    %cst_9 = arith.constant dense<0.000000e+00> : vector<8xf32>
    %15 = vector.multi_reduction <add>, %14, %cst_9 [1] : vector<8x32xf32> to vector<8xf32>
    %16 = vector.shape_cast %15 : vector<8xf32> to vector<8x1xf32>
    %cst_10 = arith.constant 0.0322580636 : f32
    %17 = vector.broadcast %cst_10 : f32 to vector<8x1xf32>
    %18 = arith.mulf %16, %17 : vector<8x1xf32>
    %19 = math.sqrt %18 : vector<8x1xf32>
    %cst_11 = arith.constant 9.99999997E-7 : f32
    %20 = vector.broadcast %cst_11 : f32 to vector<8x1xf32>
    %21 = arith.addf %19, %20 : vector<8x1xf32>
    %22 = tpu.reciprocal %21 {approx = true} : vector<8x1xf32> -> vector<8x1xf32>
    %23 = vector.broadcast %11 : vector<8x1xf32> to vector<8x32xf32>
    %24 = arith.subf %3, %23 : vector<8x32xf32>
    %25 = vector.broadcast %5 : vector<1x32xf32> to vector<8x32xf32>
    %26 = arith.mulf %25, %24 : vector<8x32xf32>
    %27 = vector.broadcast %22 : vector<8x1xf32> to vector<8x32xf32>
    %28 = arith.mulf %26, %27 : vector<8x32xf32>
    %29 = vector.broadcast %7 : vector<1x32xf32> to vector<8x32xf32>
    %30 = arith.addf %28, %29 : vector<8x32xf32>
    %c0_12 = arith.constant 0 : index
    %c0_13 = arith.constant 0 : index
    %c0_14 = arith.constant 0 : index
    %31 = vector.load %arg6[%c0_12, %c0_13, %c0_14] : memref<1x32x96xf32, #tpu.memory_space<vmem>>, vector<1x32x96xf32>
    %32 = vector.shape_cast %31 : vector<1x32x96xf32> to vector<32x96xf32>
    %cst_15 = arith.constant dense<0.000000e+00> : vector<8x96xf32>
    %33 = tpu.matmul %30, %32, %cst_15 {dimension_numbers = #tpu.dot_dimension_numbers<[1], [0], [0], [1], [0, 0, 1, 1], [], []>} : vector<8x32xf32>, vector<32x96xf32>, vector<8x96xf32> -> vector<8x96xf32>
    %c0_16 = arith.constant 0 : index
    %c0_17 = arith.constant 0 : index
    %c0_18 = arith.constant 0 : index
    %34 = vector.load %arg7[%c0_16, %c0_17, %c0_18] : memref<1x1x96xf32, #tpu.memory_space<vmem>>, vector<1x1x96xf32>
    %35 = vector.shape_cast %34 : vector<1x1x96xf32> to vector<1x96xf32>
    %36 = vector.broadcast %35 : vector<1x96xf32> to vector<8x96xf32>
    %37 = arith.addf %33, %36 : vector<8x96xf32>
    %38 = vector.extract_strided_slice %37 {offsets = [0, 0], sizes = [8, 32], strides = [1, 1]} : vector<8x96xf32> to vector<8x32xf32>
    %39 = vector.extract_strided_slice %37 {offsets = [0, 32], sizes = [8, 32], strides = [1, 1]} : vector<8x96xf32> to vector<8x32xf32>
    %40 = vector.extract_strided_slice %37 {offsets = [0, 64], sizes = [8, 32], strides = [1, 1]} : vector<8x96xf32> to vector<8x32xf32>
    %41 = vector.extract_strided_slice %38 {offsets = [0, 0], sizes = [8, 8], strides = [1, 1]} : vector<8x32xf32> to vector<8x8xf32>
    %42 = vector.extract_strided_slice %39 {offsets = [0, 0], sizes = [8, 8], strides = [1, 1]} : vector<8x32xf32> to vector<8x8xf32>
    %43 = vector.extract_strided_slice %40 {offsets = [0, 0], sizes = [8, 8], strides = [1, 1]} : vector<8x32xf32> to vector<8x8xf32>
    %cst_19 = arith.constant dense<0.000000e+00> : vector<8x8xf32>
    %44 = tpu.matmul %41, %42, %cst_19 {dimension_numbers = #tpu.dot_dimension_numbers<[1], [1], [0], [0], [0, 0, 1, 0], [], []>} : vector<8x8xf32>, vector<8x8xf32>, vector<8x8xf32> -> vector<8x8xf32>
    %cst_20 = arith.constant 0.353553385 : f32
    %45 = vector.broadcast %cst_20 : f32 to vector<8x8xf32>
    %46 = arith.mulf %44, %45 : vector<8x8xf32>
    %c0_21 = arith.constant 0 : index
    %c0_22 = arith.constant 0 : index
    %c0_23 = arith.constant 0 : index
    %c0_24 = arith.constant 0 : index
    %47 = vector.load %arg3[%c0_21, %c0_22, %c0_23, %c0_24] : memref<1x4x8x8xf32, #tpu.memory_space<vmem>>, vector<1x1x8x8xf32>
    %48 = vector.shape_cast %47 : vector<1x1x8x8xf32> to vector<8x8xf32>
    %49 = arith.addf %46, %48 : vector<8x8xf32>
    %cst_25 = arith.constant dense<0xFF800000> : vector<8xf32>
    %50 = vector.multi_reduction <maximumf>, %49, %cst_25 [1] : vector<8x8xf32> to vector<8xf32>
    %51 = vector.shape_cast %50 : vector<8xf32> to vector<8x1xf32>
    %52 = vector.broadcast %51 : vector<8x1xf32> to vector<8x8xf32>
    %53 = arith.subf %49, %52 : vector<8x8xf32>
    %54 = math.exp %53 : vector<8x8xf32>
    %cst_26 = arith.constant dense<0.000000e+00> : vector<8xf32>
    %55 = vector.multi_reduction <add>, %54, %cst_26 [1] : vector<8x8xf32> to vector<8xf32>
    %56 = vector.shape_cast %55 : vector<8xf32> to vector<8x1xf32>
    %57 = tpu.reciprocal %56 {approx = true} : vector<8x1xf32> -> vector<8x1xf32>
    %58 = vector.broadcast %57 : vector<8x1xf32> to vector<8x8xf32>
    %59 = arith.mulf %54, %58 : vector<8x8xf32>
    %cst_27 = arith.constant dense<0.000000e+00> : vector<8x8xf32>
    %60 = tpu.matmul %59, %43, %cst_27 {dimension_numbers = #tpu.dot_dimension_numbers<[1], [0], [0], [1], [0, 0, 1, 1], [], []>} : vector<8x8xf32>, vector<8x8xf32>, vector<8x8xf32> -> vector<8x8xf32>
    %61 = vector.extract_strided_slice %38 {offsets = [0, 8], sizes = [8, 8], strides = [1, 1]} : vector<8x32xf32> to vector<8x8xf32>
    %62 = vector.extract_strided_slice %39 {offsets = [0, 8], sizes = [8, 8], strides = [1, 1]} : vector<8x32xf32> to vector<8x8xf32>
    %63 = vector.extract_strided_slice %40 {offsets = [0, 8], sizes = [8, 8], strides = [1, 1]} : vector<8x32xf32> to vector<8x8xf32>
    %cst_28 = arith.constant dense<0.000000e+00> : vector<8x8xf32>
    %64 = tpu.matmul %61, %62, %cst_28 {dimension_numbers = #tpu.dot_dimension_numbers<[1], [1], [0], [0], [0, 0, 1, 0], [], []>} : vector<8x8xf32>, vector<8x8xf32>, vector<8x8xf32> -> vector<8x8xf32>
    %cst_29 = arith.constant 0.353553385 : f32
    %65 = vector.broadcast %cst_29 : f32 to vector<8x8xf32>
    %66 = arith.mulf %64, %65 : vector<8x8xf32>
    %c0_30 = arith.constant 0 : index
    %c1 = arith.constant 1 : index
    %c0_31 = arith.constant 0 : index
    %c0_32 = arith.constant 0 : index
    %67 = vector.load %arg3[%c0_30, %c1, %c0_31, %c0_32] : memref<1x4x8x8xf32, #tpu.memory_space<vmem>>, vector<1x1x8x8xf32>
    %68 = vector.shape_cast %67 : vector<1x1x8x8xf32> to vector<8x8xf32>
    %69 = arith.addf %66, %68 : vector<8x8xf32>
    %cst_33 = arith.constant dense<0xFF800000> : vector<8xf32>
    %70 = vector.multi_reduction <maximumf>, %69, %cst_33 [1] : vector<8x8xf32> to vector<8xf32>
    %71 = vector.shape_cast %70 : vector<8xf32> to vector<8x1xf32>
    %72 = vector.broadcast %71 : vector<8x1xf32> to vector<8x8xf32>
    %73 = arith.subf %69, %72 : vector<8x8xf32>
    %74 = math.exp %73 : vector<8x8xf32>
    %cst_34 = arith.constant dense<0.000000e+00> : vector<8xf32>
    %75 = vector.multi_reduction <add>, %74, %cst_34 [1] : vector<8x8xf32> to vector<8xf32>
    %76 = vector.shape_cast %75 : vector<8xf32> to vector<8x1xf32>
    %77 = tpu.reciprocal %76 {approx = true} : vector<8x1xf32> -> vector<8x1xf32>
    %78 = vector.broadcast %77 : vector<8x1xf32> to vector<8x8xf32>
    %79 = arith.mulf %74, %78 : vector<8x8xf32>
    %cst_35 = arith.constant dense<0.000000e+00> : vector<8x8xf32>
    %80 = tpu.matmul %79, %63, %cst_35 {dimension_numbers = #tpu.dot_dimension_numbers<[1], [0], [0], [1], [0, 0, 1, 1], [], []>} : vector<8x8xf32>, vector<8x8xf32>, vector<8x8xf32> -> vector<8x8xf32>
    %81 = vector.extract_strided_slice %38 {offsets = [0, 16], sizes = [8, 8], strides = [1, 1]} : vector<8x32xf32> to vector<8x8xf32>
    %82 = vector.extract_strided_slice %39 {offsets = [0, 16], sizes = [8, 8], strides = [1, 1]} : vector<8x32xf32> to vector<8x8xf32>
    %83 = vector.extract_strided_slice %40 {offsets = [0, 16], sizes = [8, 8], strides = [1, 1]} : vector<8x32xf32> to vector<8x8xf32>
    %cst_36 = arith.constant dense<0.000000e+00> : vector<8x8xf32>
    %84 = tpu.matmul %81, %82, %cst_36 {dimension_numbers = #tpu.dot_dimension_numbers<[1], [1], [0], [0], [0, 0, 1, 0], [], []>} : vector<8x8xf32>, vector<8x8xf32>, vector<8x8xf32> -> vector<8x8xf32>
    %cst_37 = arith.constant 0.353553385 : f32
    %85 = vector.broadcast %cst_37 : f32 to vector<8x8xf32>
    %86 = arith.mulf %84, %85 : vector<8x8xf32>
    %c0_38 = arith.constant 0 : index
    %c2 = arith.constant 2 : index
    %c0_39 = arith.constant 0 : index
    %c0_40 = arith.constant 0 : index
    %87 = vector.load %arg3[%c0_38, %c2, %c0_39, %c0_40] : memref<1x4x8x8xf32, #tpu.memory_space<vmem>>, vector<1x1x8x8xf32>
    %88 = vector.shape_cast %87 : vector<1x1x8x8xf32> to vector<8x8xf32>
    %89 = arith.addf %86, %88 : vector<8x8xf32>
    %cst_41 = arith.constant dense<0xFF800000> : vector<8xf32>
    %90 = vector.multi_reduction <maximumf>, %89, %cst_41 [1] : vector<8x8xf32> to vector<8xf32>
    %91 = vector.shape_cast %90 : vector<8xf32> to vector<8x1xf32>
    %92 = vector.broadcast %91 : vector<8x1xf32> to vector<8x8xf32>
    %93 = arith.subf %89, %92 : vector<8x8xf32>
    %94 = math.exp %93 : vector<8x8xf32>
    %cst_42 = arith.constant dense<0.000000e+00> : vector<8xf32>
    %95 = vector.multi_reduction <add>, %94, %cst_42 [1] : vector<8x8xf32> to vector<8xf32>
    %96 = vector.shape_cast %95 : vector<8xf32> to vector<8x1xf32>
    %97 = tpu.reciprocal %96 {approx = true} : vector<8x1xf32> -> vector<8x1xf32>
    %98 = vector.broadcast %97 : vector<8x1xf32> to vector<8x8xf32>
    %99 = arith.mulf %94, %98 : vector<8x8xf32>
    %cst_43 = arith.constant dense<0.000000e+00> : vector<8x8xf32>
    %100 = tpu.matmul %99, %83, %cst_43 {dimension_numbers = #tpu.dot_dimension_numbers<[1], [0], [0], [1], [0, 0, 1, 1], [], []>} : vector<8x8xf32>, vector<8x8xf32>, vector<8x8xf32> -> vector<8x8xf32>
    %101 = vector.extract_strided_slice %38 {offsets = [0, 24], sizes = [8, 8], strides = [1, 1]} : vector<8x32xf32> to vector<8x8xf32>
    %102 = vector.extract_strided_slice %39 {offsets = [0, 24], sizes = [8, 8], strides = [1, 1]} : vector<8x32xf32> to vector<8x8xf32>
    %103 = vector.extract_strided_slice %40 {offsets = [0, 24], sizes = [8, 8], strides = [1, 1]} : vector<8x32xf32> to vector<8x8xf32>
    %cst_44 = arith.constant dense<0.000000e+00> : vector<8x8xf32>
    %104 = tpu.matmul %101, %102, %cst_44 {dimension_numbers = #tpu.dot_dimension_numbers<[1], [1], [0], [0], [0, 0, 1, 0], [], []>} : vector<8x8xf32>, vector<8x8xf32>, vector<8x8xf32> -> vector<8x8xf32>
    %cst_45 = arith.constant 0.353553385 : f32
    %105 = vector.broadcast %cst_45 : f32 to vector<8x8xf32>
    %106 = arith.mulf %104, %105 : vector<8x8xf32>
    %c0_46 = arith.constant 0 : index
    %c3 = arith.constant 3 : index
    %c0_47 = arith.constant 0 : index
    %c0_48 = arith.constant 0 : index
    %107 = vector.load %arg3[%c0_46, %c3, %c0_47, %c0_48] : memref<1x4x8x8xf32, #tpu.memory_space<vmem>>, vector<1x1x8x8xf32>
    %108 = vector.shape_cast %107 : vector<1x1x8x8xf32> to vector<8x8xf32>
    %109 = arith.addf %106, %108 : vector<8x8xf32>
    %cst_49 = arith.constant dense<0xFF800000> : vector<8xf32>
    %110 = vector.multi_reduction <maximumf>, %109, %cst_49 [1] : vector<8x8xf32> to vector<8xf32>
    %111 = vector.shape_cast %110 : vector<8xf32> to vector<8x1xf32>
    %112 = vector.broadcast %111 : vector<8x1xf32> to vector<8x8xf32>
    %113 = arith.subf %109, %112 : vector<8x8xf32>
    %114 = math.exp %113 : vector<8x8xf32>
    %cst_50 = arith.constant dense<0.000000e+00> : vector<8xf32>
    %115 = vector.multi_reduction <add>, %114, %cst_50 [1] : vector<8x8xf32> to vector<8xf32>
    %116 = vector.shape_cast %115 : vector<8xf32> to vector<8x1xf32>
    %117 = tpu.reciprocal %116 {approx = true} : vector<8x1xf32> -> vector<8x1xf32>
    %118 = vector.broadcast %117 : vector<8x1xf32> to vector<8x8xf32>
    %119 = arith.mulf %114, %118 : vector<8x8xf32>
    %cst_51 = arith.constant dense<0.000000e+00> : vector<8x8xf32>
    %120 = tpu.matmul %119, %103, %cst_51 {dimension_numbers = #tpu.dot_dimension_numbers<[1], [0], [0], [1], [0, 0, 1, 1], [], []>} : vector<8x8xf32>, vector<8x8xf32>, vector<8x8xf32> -> vector<8x8xf32>
    %121 = tpu.concatenate %60, %80, %100, %120 in 1 : vector<8x8xf32>, vector<8x8xf32>, vector<8x8xf32>, vector<8x8xf32> -> vector<8x32xf32>
    %c0_52 = arith.constant 0 : index
    %c0_53 = arith.constant 0 : index
    %c0_54 = arith.constant 0 : index
    %122 = vector.load %arg8[%c0_52, %c0_53, %c0_54] : memref<1x32x32xf32, #tpu.memory_space<vmem>>, vector<1x32x32xf32>
    %123 = vector.shape_cast %122 : vector<1x32x32xf32> to vector<32x32xf32>
    %cst_55 = arith.constant dense<0.000000e+00> : vector<8x32xf32>
    %124 = tpu.matmul %121, %123, %cst_55 {dimension_numbers = #tpu.dot_dimension_numbers<[1], [0], [0], [1], [0, 0, 1, 1], [], []>} : vector<8x32xf32>, vector<32x32xf32>, vector<8x32xf32> -> vector<8x32xf32>
    %c0_56 = arith.constant 0 : index
    %c0_57 = arith.constant 0 : index
    %c0_58 = arith.constant 0 : index
    %125 = vector.load %arg9[%c0_56, %c0_57, %c0_58] : memref<1x1x32xf32, #tpu.memory_space<vmem>>, vector<1x1x32xf32>
    %126 = vector.shape_cast %125 : vector<1x1x32xf32> to vector<1x32xf32>
    %127 = vector.broadcast %126 : vector<1x32xf32> to vector<8x32xf32>
    %128 = arith.addf %124, %127 : vector<8x32xf32>
    %129 = arith.addf %3, %128 : vector<8x32xf32>
    %c0_59 = arith.constant 0 : index
    %c0_60 = arith.constant 0 : index
    %c0_61 = arith.constant 0 : index
    %130 = vector.load %arg10[%c0_59, %c0_60, %c0_61] : memref<1x1x32xf32, #tpu.memory_space<vmem>>, vector<1x1x32xf32>
    %131 = vector.shape_cast %130 : vector<1x1x32xf32> to vector<1x32xf32>
    %c0_62 = arith.constant 0 : index
    %c0_63 = arith.constant 0 : index
    %c0_64 = arith.constant 0 : index
    %132 = vector.load %arg11[%c0_62, %c0_63, %c0_64] : memref<1x1x32xf32, #tpu.memory_space<vmem>>, vector<1x1x32xf32>
    %133 = vector.shape_cast %132 : vector<1x1x32xf32> to vector<1x32xf32>
    %cst_65 = arith.constant dense<0.000000e+00> : vector<8xf32>
    %134 = vector.multi_reduction <add>, %129, %cst_65 [1] : vector<8x32xf32> to vector<8xf32>
    %135 = vector.shape_cast %134 : vector<8xf32> to vector<8x1xf32>
    %cst_66 = arith.constant 3.200000e+01 : f32
    %136 = vector.broadcast %cst_66 : f32 to vector<8x1xf32>
    %137 = arith.divf %135, %136 : vector<8x1xf32>
    %138 = vector.broadcast %137 : vector<8x1xf32> to vector<8x32xf32>
    %139 = arith.subf %129, %138 : vector<8x32xf32>
    %140 = arith.mulf %139, %139 : vector<8x32xf32>
    %cst_67 = arith.constant dense<0.000000e+00> : vector<8xf32>
    %141 = vector.multi_reduction <add>, %140, %cst_67 [1] : vector<8x32xf32> to vector<8xf32>
    %142 = vector.shape_cast %141 : vector<8xf32> to vector<8x1xf32>
    %cst_68 = arith.constant 0.0322580636 : f32
    %143 = vector.broadcast %cst_68 : f32 to vector<8x1xf32>
    %144 = arith.mulf %142, %143 : vector<8x1xf32>
    %145 = math.sqrt %144 : vector<8x1xf32>
    %cst_69 = arith.constant 9.99999997E-7 : f32
    %146 = vector.broadcast %cst_69 : f32 to vector<8x1xf32>
    %147 = arith.addf %145, %146 : vector<8x1xf32>
    %148 = tpu.reciprocal %147 {approx = true} : vector<8x1xf32> -> vector<8x1xf32>
    %149 = vector.broadcast %137 : vector<8x1xf32> to vector<8x32xf32>
    %150 = arith.subf %129, %149 : vector<8x32xf32>
    %151 = vector.broadcast %131 : vector<1x32xf32> to vector<8x32xf32>
    %152 = arith.mulf %151, %150 : vector<8x32xf32>
    %153 = vector.broadcast %148 : vector<8x1xf32> to vector<8x32xf32>
    %154 = arith.mulf %152, %153 : vector<8x32xf32>
    %155 = vector.broadcast %133 : vector<1x32xf32> to vector<8x32xf32>
    %156 = arith.addf %154, %155 : vector<8x32xf32>
    %c0_70 = arith.constant 0 : index
    %c0_71 = arith.constant 0 : index
    %c0_72 = arith.constant 0 : index
    %157 = vector.load %arg12[%c0_70, %c0_71, %c0_72] : memref<1x32x64xf32, #tpu.memory_space<vmem>>, vector<1x32x64xf32>
    %158 = vector.shape_cast %157 : vector<1x32x64xf32> to vector<32x64xf32>
    %cst_73 = arith.constant dense<0.000000e+00> : vector<8x64xf32>
    %159 = tpu.matmul %156, %158, %cst_73 {dimension_numbers = #tpu.dot_dimension_numbers<[1], [0], [0], [1], [0, 0, 1, 1], [], []>} : vector<8x32xf32>, vector<32x64xf32>, vector<8x64xf32> -> vector<8x64xf32>
    %c0_74 = arith.constant 0 : index
    %c0_75 = arith.constant 0 : index
    %c0_76 = arith.constant 0 : index
    %160 = vector.load %arg13[%c0_74, %c0_75, %c0_76] : memref<1x1x64xf32, #tpu.memory_space<vmem>>, vector<1x1x64xf32>
    %161 = vector.shape_cast %160 : vector<1x1x64xf32> to vector<1x64xf32>
    %162 = vector.broadcast %161 : vector<1x64xf32> to vector<8x64xf32>
    %163 = arith.addf %159, %162 : vector<8x64xf32>
    %cst_77 = arith.constant 0.000000e+00 : f32
    %164 = vector.broadcast %cst_77 : f32 to vector<8x64xf32>
    %165 = arith.maximumf %163, %164 : vector<8x64xf32>
    %c0_78 = arith.constant 0 : index
    %c0_79 = arith.constant 0 : index
    %c0_80 = arith.constant 0 : index
    %166 = vector.load %arg14[%c0_78, %c0_79, %c0_80] : memref<1x64x32xf32, #tpu.memory_space<vmem>>, vector<1x64x32xf32>
    %167 = vector.shape_cast %166 : vector<1x64x32xf32> to vector<64x32xf32>
    %cst_81 = arith.constant dense<0.000000e+00> : vector<8x32xf32>
    %168 = tpu.matmul %165, %167, %cst_81 {dimension_numbers = #tpu.dot_dimension_numbers<[1], [0], [0], [1], [0, 0, 1, 1], [], []>} : vector<8x64xf32>, vector<64x32xf32>, vector<8x32xf32> -> vector<8x32xf32>
    %c0_82 = arith.constant 0 : index
    %c0_83 = arith.constant 0 : index
    %c0_84 = arith.constant 0 : index
    %169 = vector.load %arg15[%c0_82, %c0_83, %c0_84] : memref<1x1x32xf32, #tpu.memory_space<vmem>>, vector<1x1x32xf32>
    %170 = vector.shape_cast %169 : vector<1x1x32xf32> to vector<1x32xf32>
    %171 = vector.broadcast %170 : vector<1x32xf32> to vector<8x32xf32>
    %172 = arith.addf %168, %171 : vector<8x32xf32>
    %173 = arith.addf %129, %172 : vector<8x32xf32>
    %c0_85 = arith.constant 0 : index
    %c0_86 = arith.constant 0 : index
    %174 = vector.load %arg19[%c0_85, %c0_86] : memref<8x32xf32, #tpu.memory_space<vmem>>, vector<8x32xf32>
    tpu.vector_store %arg19[%c0_85, %c0_86], %173 {strides = array<i32>} : memref<8x32xf32, #tpu.memory_space<vmem>>, vector<8x32xf32>,
    %c1_i32 = arith.constant 1 : i32
    %175 = arith.cmpi eq, %arg1, %c1_i32 : i32
    %176 = arith.extui %175 : i1 to i32
    %c0_i32_87 = arith.constant 0 : i32
    %177 = arith.cmpi ne, %176, %c0_i32_87 : i32
    scf.if %177 {
      %c0_88 = arith.constant 0 : index
      %c0_89 = arith.constant 0 : index
      %178 = vector.load %arg16[%c0_88, %c0_89] : memref<1x32xf32, #tpu.memory_space<vmem>>, vector<1x32xf32>
      %c0_90 = arith.constant 0 : index
      %c0_91 = arith.constant 0 : index
      %179 = vector.load %arg17[%c0_90, %c0_91] : memref<1x32xf32, #tpu.memory_space<vmem>>, vector<1x32xf32>
      %cst_92 = arith.constant dense<0.000000e+00> : vector<8xf32>
      %180 = vector.multi_reduction <add>, %173, %cst_92 [1] : vector<8x32xf32> to vector<8xf32>
      %181 = vector.shape_cast %180 : vector<8xf32> to vector<8x1xf32>
      %cst_93 = arith.constant 3.200000e+01 : f32
      %182 = vector.broadcast %cst_93 : f32 to vector<8x1xf32>
      %183 = arith.divf %181, %182 : vector<8x1xf32>
      %184 = vector.broadcast %183 : vector<8x1xf32> to vector<8x32xf32>
      %185 = arith.subf %173, %184 : vector<8x32xf32>
      %186 = arith.mulf %185, %185 : vector<8x32xf32>
      %cst_94 = arith.constant dense<0.000000e+00> : vector<8xf32>
      %187 = vector.multi_reduction <add>, %186, %cst_94 [1] : vector<8x32xf32> to vector<8xf32>
      %188 = vector.shape_cast %187 : vector<8xf32> to vector<8x1xf32>
      %cst_95 = arith.constant 0.0322580636 : f32
      %189 = vector.broadcast %cst_95 : f32 to vector<8x1xf32>
      %190 = arith.mulf %188, %189 : vector<8x1xf32>
      %191 = math.sqrt %190 : vector<8x1xf32>
      %cst_96 = arith.constant 9.99999997E-7 : f32
      %192 = vector.broadcast %cst_96 : f32 to vector<8x1xf32>
      %193 = arith.addf %191, %192 : vector<8x1xf32>
      %194 = tpu.reciprocal %193 {approx = true} : vector<8x1xf32> -> vector<8x1xf32>
      %195 = vector.broadcast %183 : vector<8x1xf32> to vector<8x32xf32>
      %196 = arith.subf %173, %195 : vector<8x32xf32>
      %197 = vector.broadcast %178 : vector<1x32xf32> to vector<8x32xf32>
      %198 = arith.mulf %197, %196 : vector<8x32xf32>
      %199 = vector.broadcast %194 : vector<8x1xf32> to vector<8x32xf32>
      %200 = arith.mulf %198, %199 : vector<8x32xf32>
      %201 = vector.broadcast %179 : vector<1x32xf32> to vector<8x32xf32>
      %202 = arith.addf %200, %201 : vector<8x32xf32>
      %c0_97 = arith.constant 0 : index
      %c0_98 = arith.constant 0 : index
      %c0_99 = arith.constant 0 : index
      %203 = vector.load %arg18[%c0_97, %c0_98, %c0_99] : memref<1x8x32xf32, #tpu.memory_space<vmem>>, vector<1x8x32xf32>
      %204 = vector.shape_cast %203 : vector<1x8x32xf32> to vector<8x32xf32>
      %205 = vector.shape_cast %202 : vector<8x32xf32> to vector<1x8x32xf32>
      tpu.vector_store %arg18[%c0_97, %c0_98, %c0_99], %205 {strides = array<i32>} : memref<1x8x32xf32, #tpu.memory_space<vmem>>, vector<1x8x32xf32>,
    } else {
    }
    return
  }
  func.func @transform_0(%arg0: i32, %arg1: i32) -> (i32, i32, i32) {
    %c0_i32 = arith.constant 0 : i32
    %c0_i32_0 = arith.constant 0 : i32
    %c0_i32_1 = arith.constant 0 : i32
    return %arg0, %c0_i32, %c0_i32_0 : i32, i32, i32
  }
  func.func @transform_1(%arg0: i32, %arg1: i32) -> (i32, i32, i32, i32) {
    %c0_i32 = arith.constant 0 : i32
    %c0_i32_0 = arith.constant 0 : i32
    %c0_i32_1 = arith.constant 0 : i32
    %c0_i32_2 = arith.constant 0 : i32
    return %arg0, %c0_i32, %c0_i32_0, %c0_i32_1 : i32, i32, i32, i32
  }
  func.func @transform_2(%arg0: i32, %arg1: i32) -> (i32, i32, i32) {
    %c0_i32 = arith.constant 0 : i32
    %c0_i32_0 = arith.constant 0 : i32
    %c0_i32_1 = arith.constant 0 : i32
    return %arg1, %c0_i32, %c0_i32_0 : i32, i32, i32
  }
  func.func @transform_3(%arg0: i32, %arg1: i32) -> (i32, i32, i32) {
    %c0_i32 = arith.constant 0 : i32
    %c0_i32_0 = arith.constant 0 : i32
    %c0_i32_1 = arith.constant 0 : i32
    return %arg1, %c0_i32, %c0_i32_0 : i32, i32, i32
  }
  func.func @transform_4(%arg0: i32, %arg1: i32) -> (i32, i32, i32) {
    %c0_i32 = arith.constant 0 : i32
    %c0_i32_0 = arith.constant 0 : i32
    %c0_i32_1 = arith.constant 0 : i32
    return %arg1, %c0_i32, %c0_i32_0 : i32, i32, i32
  }
  func.func @transform_5(%arg0: i32, %arg1: i32) -> (i32, i32, i32) {
    %c0_i32 = arith.constant 0 : i32
    %c0_i32_0 = arith.constant 0 : i32
    %c0_i32_1 = arith.constant 0 : i32
    return %arg1, %c0_i32, %c0_i32_0 : i32, i32, i32
  }
  func.func @transform_6(%arg0: i32, %arg1: i32) -> (i32, i32, i32) {
    %c0_i32 = arith.constant 0 : i32
    %c0_i32_0 = arith.constant 0 : i32
    %c0_i32_1 = arith.constant 0 : i32
    return %arg1, %c0_i32, %c0_i32_0 : i32, i32, i32
  }
  func.func @transform_7(%arg0: i32, %arg1: i32) -> (i32, i32, i32) {
    %c0_i32 = arith.constant 0 : i32
    %c0_i32_0 = arith.constant 0 : i32
    %c0_i32_1 = arith.constant 0 : i32
    return %arg1, %c0_i32, %c0_i32_0 : i32, i32, i32
  }
  func.func @transform_8(%arg0: i32, %arg1: i32) -> (i32, i32, i32) {
    %c0_i32 = arith.constant 0 : i32
    %c0_i32_0 = arith.constant 0 : i32
    %c0_i32_1 = arith.constant 0 : i32
    return %arg1, %c0_i32, %c0_i32_0 : i32, i32, i32
  }
  func.func @transform_9(%arg0: i32, %arg1: i32) -> (i32, i32, i32) {
    %c0_i32 = arith.constant 0 : i32
    %c0_i32_0 = arith.constant 0 : i32
    %c0_i32_1 = arith.constant 0 : i32
    return %arg1, %c0_i32, %c0_i32_0 : i32, i32, i32
  }
  func.func @transform_10(%arg0: i32, %arg1: i32) -> (i32, i32, i32) {
    %c0_i32 = arith.constant 0 : i32
    %c0_i32_0 = arith.constant 0 : i32
    %c0_i32_1 = arith.constant 0 : i32
    return %arg1, %c0_i32, %c0_i32_0 : i32, i32, i32
  }
  func.func @transform_11(%arg0: i32, %arg1: i32) -> (i32, i32, i32) {
    %c0_i32 = arith.constant 0 : i32
    %c0_i32_0 = arith.constant 0 : i32
    %c0_i32_1 = arith.constant 0 : i32
    return %arg1, %c0_i32, %c0_i32_0 : i32, i32, i32
  }
  func.func @transform_12(%arg0: i32, %arg1: i32) -> (i32, i32, i32) {
    %c0_i32 = arith.constant 0 : i32
    %c0_i32_0 = arith.constant 0 : i32
    %c0_i32_1 = arith.constant 0 : i32
    return %arg1, %c0_i32, %c0_i32_0 : i32, i32, i32
  }
  func.func @transform_13(%arg0: i32, %arg1: i32) -> (i32, i32, i32) {
    %c0_i32 = arith.constant 0 : i32
    %c0_i32_0 = arith.constant 0 : i32
    %c0_i32_1 = arith.constant 0 : i32
    return %arg1, %c0_i32, %c0_i32_0 : i32, i32, i32
  }
  func.func @transform_14(%arg0: i32, %arg1: i32) -> (i32, i32) {
    %c0_i32 = arith.constant 0 : i32
    %c0_i32_0 = arith.constant 0 : i32
    %c0_i32_1 = arith.constant 0 : i32
    return %c0_i32, %c0_i32_0 : i32, i32
  }
  func.func @transform_15(%arg0: i32, %arg1: i32) -> (i32, i32) {
    %c0_i32 = arith.constant 0 : i32
    %c0_i32_0 = arith.constant 0 : i32
    %c0_i32_1 = arith.constant 0 : i32
    return %c0_i32, %c0_i32_0 : i32, i32
  }
  func.func @transform_16(%arg0: i32, %arg1: i32) -> (i32, i32, i32) {
    %c0_i32 = arith.constant 0 : i32
    %c0_i32_0 = arith.constant 0 : i32
    %c0_i32_1 = arith.constant 0 : i32
    return %arg0, %c0_i32, %c0_i32_0 : i32, i32, i32
  }
}

</mosaic_0001>

<bundles_post_ra>
// kernel: tpu_custom_call.1
= control target key start
LH: loop header
LB: loop body
LE: loop exit
PB: predicated region body
PF: predicated region fallthrough
CT: control target
= control target key end

     0   :  { %s3373_s0 = inlined_call_operand.hbm [shape: f32[2,8,32], index: 0, kind: input, shape index: {}]   ;;  %s3374_s1 = inlined_call_operand.vmem [shape: f32[2,4,8,8], index: 1, kind: input, shape index: {}]   ;;  %s3375_s2 = inlined_call_operand.vmem [shape: f32[2,1,32], index: 2, kind: input, shape index: {}]   ;;  %s3376_s3 = inlined_call_operand.vmem [shape: f32[2,1,32], index: 3, kind: input, shape index: {}]   ;;  %s3377_s4 = inlined_call_operand.vmem [shape: f32[2,32,96], index: 4, kind: input, shape index: {}]   ;;  %s3378_s5 = inlined_call_operand.vmem [shape: f32[2,1,96], index: 5, kind: input, shape index: {}]   ;;  %s3379_s6 = inlined_call_operand.vmem [shape: f32[2,32,32], index: 6, kind: input, shape index: {}]   ;;  %s3380_s7 = inlined_call_operand.vmem [shape: f32[2,1,32], index: 7, kind: input, shape index: {}]   ;;  %s3381_s8 = inlined_call_operand.vmem [shape: f32[2,1,32], index: 8, kind: input, shape index: {}]   ;;  %s3382_s9 = inlined_call_operand.vmem [shape: f32[2,1,32], index: 9, kind: input, shape index: {}]   ;;  %s3383_s10 = inlined_call_operand.hbm [shape: f32[2,32,64], index: 10, kind: input, shape index: {}]   ;;  %s3384_s11 = inlined_call_operand.vmem [shape: f32[2,1,64], index: 11, kind: input, shape index: {}]   ;;  %s3385_s12 = inlined_call_operand.vmem [shape: f32[2,64,32], index: 12, kind: input, shape index: {}]   ;;  %s3386_s13 = inlined_call_operand.vmem [shape: f32[2,1,32], index: 13, kind: input, shape index: {}]   ;;  %s3387_s14 = inlined_call_operand.vmem [shape: f32[1,32], index: 14, kind: input, shape index: {}]   ;;  %s3388_s15 = inlined_call_operand.vmem [shape: f32[1,32], index: 15, kind: input, shape index: {}]   ;;  %s3389_s16 = inlined_call_operand.hbm [shape: f32[2,8,32], index: 16, kind: output, shape index: {}]  }
   0x1   :  { %3413 = sst [smem:[#allocation28_spill]] %s3373_s0 }
   0x2   :  { %3414 = sst [smem:[#allocation29_spill]] %s3374_s1 }
   0x3   :  { %3415 = sst [smem:[#allocation30_spill]] %s3377_s4 }
   0x4   :  { %3416 = sst [smem:[#allocation31_spill]] %s3379_s6 }
   0x5   :  { %3417 = sst [smem:[#allocation32_spill]] %s3380_s7 }
   0x6   :  { %3418 = sst [smem:[#allocation33_spill]] %s3381_s8 }
   0x7   :  { %3419 = sst [smem:[#allocation34_spill]] %s3382_s9 }
   0x8   :  { %3420 = sst [smem:[#allocation35_spill]] %s3383_s10 }
   0x9   :  { %3421 = sst [smem:[#allocation36_spill]] %s3384_s11 }
   0xa   :  { %3422 = sst [smem:[#allocation37_spill]] %s3385_s12 }
   0xb   :  { %3423 = sst [smem:[#allocation38_spill]] %s3386_s13 }
   0xc   :  { %3424 = sst [smem:[#allocation39_spill]] %s3387_s14 }
   0xd   :  { %3425 = sst [smem:[#allocation40_spill]] %s3388_s15 }
   0xe   :  { %3426 = sst [smem:[#allocation41_spill]] %s3389_s16 }
   0xf   :  { %21 = vsyncpa [#allocation4], 0 }
  0x10   :  { %23 = vsyncpa [#allocation4 + $0x1], 0 }
  0x11   :  { %24 = vsyncpa [#allocation7], 0 }
  0x12   :  { %26 = vsyncpa [#allocation7 + $0x1], 0 }
  0x13   :  { %27 = vsyncpa [#allocation5], 0 }
  0x14   :  { %29 = vsyncpa [#allocation5 + $0x1], 0  ;;  %s2851_s21 = smov 0   ;;  %s2853_s22 = smov 0  }
  0x15   :  { %s2855_s23 = smov 0   ;;  %s2857_s24 = smov 0  }
  0x16   :  { %s2859_s25 = smov 0   ;;  %s2861_s26 = smov 0  }
  0x17   :  { %s2863_s27 = smov 0   ;;  %s2865_s28 = smov 0  }
  0x18   :  { %s2867_s29 = smov 0   ;;  %s2869_s30 = smov 0  }
  0x19   :  { %s2871_s0 = smov 0  }
  0x1a LB: > { %3427 = sst [smem:[#allocation12_spill]] %s2706_s22  ;;  %s2179_s17 = sadd.s32 4294967295, %s2742_s0   ;;  %s2742_s0 = sphi %s2871_s0, %s35_s0   ;;  %s2738_s30 = sphi %s2869_s30, %s3498_s30   ;;  %s2734_s29 = sphi %s2867_s29, %s3497_s29   ;;  %s2730_s28 = sphi %s2865_s28, %s3496_s28   ;;  %s2726_s27 = sphi %s2863_s27, %s3495_s27   ;;  %s2722_s26 = sphi %s2861_s26, %s3494_s26   ;;  %s2718_s25 = sphi %s2859_s25, %s3493_s25   ;;  %s2714_s24 = sphi %s2857_s24, %s3492_s24   ;;  %s2710_s23 = sphi %s2855_s23, %s3491_s23   ;;  %s2706_s22 = sphi %s2853_s22, %s3490_s22   ;;  %s2702_s21 = sphi %s2851_s21, %s3489_s21  }
  0x1b   : > { %3428 = sst [smem:[#allocation13_spill]] %s2710_s23  ;;  %s2180_s18 = sadd.s32 4294967294, %s2742_s0  }
  0x1c   : > { %3429 = sst [smem:[#allocation14_spill]] %s2714_s24  ;;  %p61_p0 = scmp.ne.s32.totalorder %s2722_s26, %s2718_s25 }
  0x1d   : > { %3430 = sst [smem:[#allocation15_spill]] %s2718_s25  ;;  %p62_p1 = scmp.eq.s32.totalorder %s2742_s0, 0 }
  0x1e   : > { %3431 = sst [smem:[#allocation16_spill]] %s2722_s26  ;;  %p67_p2 = scmp.ne.s32.totalorder %s2718_s25, %s2714_s24 }
  0x1f   : > { %3432 = sst [smem:[#allocation17_spill]] %s2730_s28  ;;  %p68_p3 = scmp.eq.s32.totalorder %s2179_s17, 0 }
  0x20   : > { %3433 = sst [smem:[#allocation18_spill]] %s2734_s29  ;;  %p2913_p4 = por %p62_p1, %p61_p0 }
  0x21   : > { %3434 = sst [smem:[#allocation19_spill]] %s2738_s30  ;;  %p321_p5 = scmp.ne.s32.totalorder %s2710_s23, %s2706_s22 }
  0x22   : > { %3435 = sst [smem:[#allocation20_spill]] %s2742_s0  ;;  %p2919_p6 = por %p68_p3, %p67_p2 }
  0x23   : > { %p327_p7 = scmp.ne.s32.totalorder %s2706_s22, %s2702_s21  ;;  %p2924_p8 = por %p321_p5, %p62_p1 }
  0x24   : > { %s3437_s15 = scalar_select %p2919_p6, 1, 0 }
  0x25   : > { %p471_p9 = scmp.eq.s32.totalorder %s2179_s17, 3  ;;  %p2928_p10 = por %p327_p7, %p68_p3 }
  0x26   : > { %p477_p11 = scmp.eq.s32.totalorder %s2180_s18, 3  ;;  %p2419_p1 = scmp.lt.s32.totalorder %s2742_s0, 4 }
  0x27   : > { %s3439_s20 = scalar_select %p2928_p10, 1, 0 }
  0x28   : > { %p2932_p12 = por %p471_p9, %p61_p0  ;;  %p2936_p13 = por %p477_p11, %p67_p2 }
  0x29   : > { %s503_s21 = sand.u32 1, %s2722_s26   ;;  %s2184_s13 = sshll.u32 %s2738_s30, 7 }
  0x2a   : > { %s3440_s24 = scalar_select %p2932_p12, 1, 0 }
  0x2b   : > { %s3442_s14 = scalar_select %p2936_p13, 1, 0 }
  0x2c   : > { %3441 = sst [smem:[#allocation21_spill]] %s3440_s24  ;;  %s2183_s12 = sshll.u32 %s503_s21, 3 }
  0x2d   : > { %3443 = sst [smem:[#allocation22_spill]] %s3442_s14  ;;  %s3444_s17 = sld [smem:[#allocation28_spill]] }
  0x2e   : > { %s507_s18 = scalar_lea.vmem [#allocation3], %s2183_s12  ;;  %p2950_p0 = pnand %p2419_p1, %p2913_p4 }
  0x2f   : > { %s514_s7 = sshll.u32 %s507_s18, 4  ;;  %p2958_p2 = pnand %p2419_p1, %p2924_p8  ;;  %s2954_s7 = int_to_ptr.vmem [resolvable:$true] %s514_s7 }
  0x30   : > { %s504_s11 = scalar_lea.sflag [#allocation4], %s503_s21  ;;  %p2558_p7 = pneg %p2950_p0 }
  0x33   : > { %s2946_s8 = scalar_lea.hbm %s3444_s17, %s2184_s13  ;;  %s2561_s18 = scalar_lea.hbm %s3444_s17, 256 }
  0x34   : > { %s2556_s13 = scalar_lea.hbm %s2946_s8, 128  ;;  %p2562_p8 = scmp.lt.u32.totalorder %s2946_s8, %s3444_s17 }
  0x35   : > { %p2557_p5 = scmp.ne.s32.totalorder %s2946_s8, %s2556_s13  ;;  %p2563_p11 = scmp.lt.u32.totalorder %s2561_s18, %s2556_s13 }
  0x36   : > { %p2565_p3 = scmp.lt.u32.totalorder %s2556_s13, %s2946_s8 }
  0x37   : > { %p2559_p4 = pnand %p2558_p7, %p2557_p5  ;;  %p2564_p1 = por %p2563_p11, %p2562_p8 }
  0x39   : > { %p2560_p9 = pneg %p2559_p4  ;;  %p2566_p13 = por %p2565_p3, %p2564_p1 }
  0x3b   : > { %p2567_p12 = pnand %p2566_p13, %p2560_p9 }
  0x3d   : > { %2570 = shalt.err (!%p2567_p12)
}
  0x3e   : > { %s2571_s21 = scalar_lea.vmem %s2954_s7, 128  ;;  %s2744_s12 = smov [#allocation3]  }
  0x3f   : > { %p2572_p5 = scmp.ne.s32.totalorder %s2954_s7, %s2571_s21  ;;  %s2576_s16 = sshll.u32 %s2744_s12, 4  ;;  %s2577_s16 = int_to_ptr.vmem [resolvable:$false] %s2576_s16 }
  0x40   : > { %s2578_s14 = scalar_lea.vmem %s2577_s16, 256  ;;  %p2579_p6 = scmp.lt.s32.totalorder %s2954_s7, %s2577_s16 }
  0x41   : > { %p2574_p4 = pnand %p2572_p5, %p2558_p7  ;;  %p2580_p8 = scmp.lt.s32.totalorder %s2578_s14, %s2571_s21 }
  0x43   : > { %p2575_p10 = pneg %p2574_p4  ;;  %p2581_p11 = por %p2580_p8, %p2579_p6 }
  0x45   : > { %p2582_p3 = pnand %p2581_p11, %p2575_p10 }
  0x47   : > { %2585 = shalt.err (!%p2582_p3)
}
  0x48   : > { %2411 = dma.hbm_to_vmem [thread:$0]  (!%p2950_p0), %s2946_s8, 128, %s2954_s7, %s504_s11  }
  0x49   : > { %p620_p12 = scmp.lt.s32.totalorder %s2742_s0, 5  ;;  %s314_s13 = sadd.s32 1, %s2710_s23 }
  0x4a   : > { %p3447_p13 = scmp.ge.s32.totalorder %s2742_s0, 1  ;;  %s44_s24 = sadd.s32 1, %s2734_s29 }
  0x4b   : > { %s581_s19 = sand.u32 1, %s2710_s23   ;;  %p45_p10 = scmp.ge.s32.totalorder %s44_s24, 2 }
  0x4c   : > { %p2992_p6 = pnand %p3447_p13, %p620_p12  ;;  %s2185_s21 = sshll.u32 %s581_s19, 5 }
  0x4d   : > { %s2235_s12 = sshll.u32 %s2734_s29, 9  ;;  %s3500_s24 = smov (%p45_p10, %s44_s24), 0 }
  0x4e   : > { %3449 = sst [smem:[#allocation23_spill]] %s3500_s24  ;;  %s3450_s16 = sadd.s32 1, %s2738_s30 }
  0x4f   : > { %s3502_s16 = smov (!%p45_p10, %s3450_s16), %s2738_s30  ;;  %s311_s7 = ssub.s32 %s2734_s29, %s3500_s24 }
  0x50   : > { %p49_p0 = scmp.ge.s32.totalorder %s3502_s16, 2  ;;  %p312_p7 = scmp.eq.s32.totalorder %s311_s7, 0 }
  0x51   : > { %s3451_s10 = sld [smem:[#allocation35_spill]]  ;;  %s585_s17 = scalar_lea.vmem [#allocation6], %s2185_s21 }
  0x52   : > { %s592_s0 = sshll.u32 %s585_s17, 4  ;;  %s3504_s16 = smov (%p49_p0, %s3502_s16), 0  ;;  %s3018_s0 = int_to_ptr.vmem [resolvable:$true] %s592_s0 }
  0x53   : > { %3452 = sst [smem:[#allocation24_spill]] %s3504_s16  ;;  %s51_s24 = ssub.s32 %s2738_s30, %s3504_s16 }
  0x54   : > { %s3014_s6 = scalar_select %p312_p7, %s2710_s23, %s314_s13  }
  0x55   : > { %p52_p9 = scmp.eq.s32.totalorder %s51_s24, 0  ;;  %s3454_s7 = sadd.s32 1, %s2722_s26 }
  0x56   : > { %3453 = sst [smem:[#allocation25_spill]] %s3014_s6  ;;  %p2588_p5 = pneg %p2958_p2 }
  0x57   : > { %s3009_s14 = scalar_lea.hbm %s3451_s10, %s2235_s12  ;;  %s3025_s12 = scalar_lea.sflag [#allocation7], %s581_s19 }
  0x58   : > { %s3023_s29 = scalar_select %p52_p9, %s2722_s26, %s3454_s7  }
  0x59   : > { %s2586_s8 = scalar_lea.hbm %s3009_s14, 512  ;;  %s2591_s21 = scalar_lea.hbm %s3451_s10, 1024 }
  0x5a   : > { %3455 = sst [smem:[#allocation26_spill]] %s3023_s29  ;;  %p2587_p1 = scmp.ne.s32.totalorder %s3009_s14, %s2586_s8 }
  0x5b   : > { %p2592_p11 = scmp.lt.u32.totalorder %s3009_s14, %s3451_s10  ;;  %p2593_p3 = scmp.lt.u32.totalorder %s2591_s21, %s2586_s8 }
  0x5c   : > { %p2589_p4 = pnand %p2588_p5, %p2587_p1  ;;  %p2595_p13 = scmp.lt.u32.totalorder %s2586_s8, %s3009_s14 }
  0x5d   : > { %p2594_p12 = por %p2593_p3, %p2592_p11 }
  0x5e   : > { %p2590_p8 = pneg %p2589_p4 }
  0x5f   : > { %p2596_p10 = por %p2595_p13, %p2594_p12 }
  0x61   : > { %p2597_p0 = pnand %p2596_p10, %p2590_p8 }
  0x63   : > { %2600 = shalt.err (!%p2597_p0)
}
  0x64   : > { %s2601_s24 = scalar_lea.vmem %s3018_s0, 512  ;;  %s2745_s19 = smov [#allocation6]  }
  0x65   : > { %p2602_p7 = scmp.ne.s32.totalorder %s3018_s0, %s2601_s24  ;;  %s2606_s7 = sshll.u32 %s2745_s19, 4  ;;  %s2607_s7 = int_to_ptr.vmem [resolvable:$false] %s2606_s7 }
  0x66   : > { %s2608_s16 = scalar_lea.vmem %s2607_s7, 1024  ;;  %p2609_p4 = scmp.lt.s32.totalorder %s3018_s0, %s2607_s7 }
  0x67   : > { %p2604_p9 = pnand %p2602_p7, %p2588_p5  ;;  %p2610_p11 = scmp.lt.s32.totalorder %s2608_s16, %s2601_s24 }
  0x69   : > { %p2605_p1 = pneg %p2604_p9  ;;  %p2611_p3 = por %p2610_p11, %p2609_p4 }
  0x6b   : > { %p2612_p12 = pnand %p2611_p3, %p2605_p1 }
  0x6d   : > { %2615 = shalt.err (!%p2612_p12)
}
  0x6e   : > { %s2746_s8 = smov 128   ;;  %s2747_s17 = smov 8  }
  0x6f   : > { %2414 = dma.hbm_to_vmem [thread:$0]  (!%p2958_p2), %s3009_s14, 512, %s3018_s0, %s3025_s12, %s2746_s8, %s2746_s8, %s2747_s17  }
  0x70   : > { %624 = sbr.rel (%p2992_p6) target bundleno = 3012 (0xbc4), region = 84 }
  0x77   : > { %s3056_s13 = sand.u32 1, %s2718_s25   ;;  %p3456_p5 = scmp.ne.s32.totalorder %s3437_s15, 0 }
  0x78   : > { %s3405_s21 = sshll.u32 %s3056_s13, 3  ;;  %s627_s11 = scalar_lea.sflag [#allocation4], %s3056_s13 }
  0x79   : > { %s3062_s24 = scalar_lea.vmem [#allocation3], %s3405_s21 }
  0x7a   : > { %2689 = dma.done.wait (%p3456_p5), %s627_s11, 128  }
  0x7b   : > { %2691 = vsyncadd (%p3456_p5), %s627_s11, 4294967168  ;;  %s635_s0 = sand.u32 1, %s2706_s22   ;;  %p3458_p2 = scmp.ne.s32.totalorder %s3439_s20, 0 }
  0x7c   : > { %s2190_s9 = sshll.u32 %s635_s0, 5  ;;  %s636_s18 = scalar_lea.sflag [#allocation7], %s635_s0 }
  0x7d   : > { %s3069_s14 = scalar_lea.vmem [#allocation6], %s2190_s9 }
  0x7e   : > { %3457 = sst [smem:[#allocation27_spill]] %s3069_s14 }
  0x7f   : > { %2693 = dma.done.wait (%p3458_p2), %s636_s18, 512  }
  0x80   : > { %2695 = vsyncadd (%p3458_p2), %s636_s18, 4294966784  ;;  %p737_p6 = scmp.lt.s32.totalorder %s2730_s28, 1  ;;  %p742_p8 = scmp.lt.s32.totalorder %s2726_s27, 1 }
  0x81   : > { %s3459_s1 = sld [smem:[#allocation29_spill]]  ;;  %s3460_s4 = sld [smem:[#allocation30_spill]] }
  0x82   : > { %s738_s15 = scalar_select %p737_p6, %s2730_s28, 1 }
  0x83   : > { %s3079_s12 = scalar_select %p742_p8, %s2726_s27, 1 }
  0x84   : > { %s2236_s20 = sshll.u32 %s738_s15, 5  ;;  %s3463_s6 = sld [smem:[#allocation33_spill]] }
  0x85   : > { %s2237_s21 = sshll.u32 %s3079_s12, 5  ;;  %s3465_s15 = sld [smem:[#allocation36_spill]] }
  0x86   : > { %s2239_s14 = sshll.u32 %s3079_s12, 6  ;;  %s3467_s17 = sld [smem:[#allocation38_spill]] }
  0x87   : > { %s3084_s16 = scalar_lea.vmem %s3459_s1, %s2236_s20  ;;  %s3098_s29 = scalar_lea.vmem %s3460_s4, %s2237_s21 }
  0x88   : > { %s3461_s1 = sld [smem:[#allocation31_spill]]  ;;  %s3464_s4 = sld [smem:[#allocation34_spill]] }
  0x89   : > { %s3468_s18 = sshll.u32 %s3056_s13, 3  ;;  %p2200_p13 = scmp.ne.s32.totalorder %s2726_s27, 0 }
  0x8a   : > { %s766_s23 = scalar_lea.vmem %s3463_s6, %s3079_s12  ;;  %s3137_s6 = scalar_lea.vmem [#allocation8], %s3468_s18  ;;  %v785_v0 = vld [vmem:[%s3062_s24] sm:$0xff] (!%p2200_p13)  ;;  %vm786_vm0 = vcmask (!%p2200_p13), 261120  }
  0x8b   : > { %s772_s19 = scalar_lea.vmem %s3465_s15, %s3079_s12  ;;  %787 = vst.msk [vmem:[#allocation2] sm:$0xff] (!%p2200_p13), %vm786_vm0, %v785_v0 }
  0x8c   : > { %s780_s0 = scalar_lea.vmem %s3467_s17, %s3079_s12 }
  0x8e   : > { %s3107_s25 = scalar_lea.vmem %s3461_s1, %s2237_s21  ;;  %s769_s22 = scalar_lea.vmem %s3464_s4, %s3079_s12 }
  0x8f   : > { %s3466_s21 = sld [smem:[#allocation37_spill]]  ;;  %784 = sbr.rel (%p2200_p13) target bundleno = 150 (0x96), region = 96 }
  0x95   : > { %s3129_s7 = scalar_lea.vmem %s3466_s21, %s2239_s14 }
  0x96 PF: > { %v3141_v1 = vld [vmem:[#allocation2] sm:$0xff]  ;;  %vm791_vm1 = vcmask 261120   ;;  %v828_v9 = vld [vmem:[%s3098_s29 + $0x8] sm:$0xff]  ;;  %v829_v10 = vld [vmem:[%s3098_s29 + $0x10] sm:$0xff]  ;;  %v2748_v11 = vmov 0.0|0.0   ;;  %vm2749_vm2 = vmmov 0   ;;  %s3470_s9 = scalar_lea.vmem %s3376_s3, %s3079_s12  ;;  %s3471_s26 = scalar_lea.vmem %s3378_s5, %s3079_s12 }
  0x97   : > { %v792_v2 = vsel %vm791_vm1, %v3141_v1, 0.0  ;;  %v827_v8 = vld [vmem:[%s3098_s29] sm:$0xff]  ;;  %2372 = vmatprep.subr.bf16.mxu1 %v2748_v11  ;;  %v830_v13 = vld [vmem:[%s3098_s29 + $0x18] sm:$0xff]  ;;  %v2750_v14 = vmov 0.0   ;;  %s3469_s29 = scalar_lea.vmem %s3375_s2, %s3079_s12  ;;  %s2751_s15 = smov 120   ;;  %vm914_vm5 = vcmask 64512  }
  0x98   : > { %793 = vadd.xlane.f32.xlu0 %v792_v2  ;;  %v2373_v12 = vpack.c.bf16 %v828_v9, %v827_v8  ;;  %2288 = vmatprep.mubr.msk.f32.mxu1 %vm2749_vm2, %v2750_v14  ;;  %v2376_v15 = vpack.c.bf16 %v830_v13, %v829_v10  ;;  %v2201_v24 = vld [vmem:[%s3469_s29] ss:$0 sm:$0xff]  ;;  %s2752_s20 = smov 96   ;;  %s2753_s1 = smov 88   ;;  %v2210_v47 = vld [vmem:[%s3084_s16 + $0x8] sm:$0xff]  ;;  %v2214_v54 = vld [vmem:[%s3084_s16 + $0x10] sm:$0xff] }
  0x99   : > { %2301 = vmatprep.subr.mxu0 %v2750_v14  ;;  %2303 = vmatprep.mubr.msk.f32.mxu0 %vm2749_vm2, %v2750_v14  ;;  %v2202_v27 = vld [vmem:[%s3470_s9] ss:$0 sm:$0xff]  ;;  %s2754_s21 = smov 80   ;;  %s2755_s8 = smov 112   ;;  %v2218_v60 = vld [vmem:[%s3084_s16 + $0x18] sm:$0xff]  ;;  %vm1599_vm6 = vcmask 130048  }
  0x9a   : > { %2374 = vmatpush3.bf16.msra.mxu1 %v2373_v12  ;;  %v2203_v30 = vld [vmem:[%s3471_s26] ss:$0 sm:$0xff]  ;;  %s2756_s11 = smov 72   ;;  %s2757_s17 = smov 104   ;;  %vm1601_vm7 = vcmask 195584   ;;  %vm1824_vm10 = vcmask 523264  }
  0x9b   : > { %2375 = vmatprep.subr.bf16.mxu1 %v2748_v11  ;;  %v990_v42 = vld [vmem:[%s3084_s16] sm:$0xff]  ;;  %s2758_s18 = smov 64   ;;  %s2759_s16 = smov 48  }
  0x9c   : > { %s2760_s4 = smov 40   ;;  %s2761_s28 = smov 56  }
  0x9d   : > { %s2762_s29 = smov 8   ;;  %s2763_s24 = smov 16  }
  0x9e   : > { %2377 = vmatpush3.bf16.msra.mxu1 %v2376_v15  ;;  %s2764_s14 = smov 24   ;;  %s3473_s30 = sld [smem:[#allocation32_spill]] }
  0x9f   : > { %2291 = vmatprep.subr.mxu1 %v2750_v14  ;;  %p2228_p10 = scmp.ne.s32.totalorder %s2726_s27, 1 }
  0xa4   : > { %s3474_s26 = scalar_lea.vmem %s3473_s30, %s3079_s12 }
 0x125   : > { %v794_v3 = vpop.xlane.xlu0 %793 }
 0x126   : > { %v796_v4 = vmul.f32 0.03125, %v794_v3 }
 0x128   : > { %v797_v5 = vsub.f32 %v3141_v1, %v796_v4 }
 0x12a   : > { %v798_v6 = vmul.f32 %v797_v5, %v797_v5  ;;  %v818_v25 = vmul.f32 %v2201_v24, %v797_v5 }
 0x12c   : > { %v799_v7 = vsel %vm791_vm1, %v798_v6, 0.0 }
 0x12d   : > { %800 = vadd.xlane.f32.xlu0 %v799_v7 }
 0x1ba   : > { %v801_v16 = vpop.xlane.xlu0 %800 }
 0x1bb   : > { %v802_v17 = vmul.f32 0.032258064, %v801_v16 }
 0x1bd   : > { %2528 = vrsqrt.f32 %v802_v17  ;;  %vm805_vm3 = vcmp.eq.f32.partialorder %v802_v17, inf  ;;  %v808_v20 = vand.u32 2147483648, %v802_v17  ;;  %vm807_vm4 = vcmp.eq.f32.partialorder %v802_v17, 0.0 }
 0x1c7   : > { %v2529_v18 = vpop.eup %2528 }
 0x1c8   : > { %v804_v19 = vmul.f32 %v2529_v18, %v802_v17 }
 0x1ca   : > { %v806_v21 = vsel %vm805_vm3, %v802_v17, %v804_v19 }
 0x1cb   : > { %v809_v22 = vsel %vm807_vm4, %v808_v20, %v806_v21 }
 0x1cc   : > { %v810_v23 = vadd.f32 1e-06, %v809_v22 }
 0x1ce   : > { %2530 = vrcp.f32 %v810_v23 }
 0x1d8   : > { %v2531_v26 = vpop.eup %2530 }
 0x1d9   : > { %v819_v28 = vmul.f32 %v2531_v26, %v818_v25 }
 0x1db   : > { %v826_v29 = vadd.f32 %v2202_v27, %v819_v28 }
 0x1dd   : > { %2289 = vmatmul.mubr.msk.f32.vlgmr.msra.gmra.mrb[0].mxu1 %vm791_vm1, %v826_v29 }
 0x1de   : > { %2293 = vmatprep.mubr.msk.f32.mxu1 %vm2749_vm2, %v2750_v14 }
 0x2b0   : > { %v907_v31 = vpop.f32.mrb[0].mxu1 }
 0x2b1   : > { %v3177_v32 = vadd.f32 %v2203_v30, %v907_v31  ;;  %v2290_v33 = vpop.f32.mrb[1].mxu1 }
 0x2b3   : > { %1079 = vrot.lane.b32.xlu0 %v3177_v32, %s2751_s15  ;;  %912 = vrot.lane.b32.xlu1 %v3177_v32, %s2752_s20 }
 0x2b7   : > { %1081 = vrot.lane.b32.xlu1 %v3177_v32, %s2753_s1 }
 0x2bb   : > { %1250 = vrot.lane.b32.xlu1 %v3177_v32, %s2754_s21 }
 0x2bf   : > { %1248 = vrot.lane.b32.xlu1 %v3177_v32, %s2755_s8 }
 0x2c3   : > { %1419 = vrot.lane.b32.xlu1 %v3177_v32, %s2756_s11 }
 0x2c7   : > { %1417 = vrot.lane.b32.xlu1 %v3177_v32, %s2757_s17 }
 0x325   : > { %v913_v34 = vpop.permute.xlu1 %912  ;;  %v1080_v36 = vpop.permute.xlu0 %1079 }
 0x326   : > { %2292 = vmatpush3.xpose.msk.msra.mxu1 %vm914_vm5, %v913_v34 }
 0x327   : > { %2296 = vmatprep.subr.mxu1 %v2750_v14 }
 0x329   : > { %2294 = vmatmul.mubr.msk.f32.vlgmr.msra.gmra.mrb[2].mxu1 %vm914_vm5, %v3177_v32  ;;  %v1082_v35 = vpop.permute.xlu1 %1081 }
 0x32a   : > { %2302 = vmatpush3.xpose.msk.msra.mxu0 %vm914_vm5, %v1082_v35  ;;  %2298 = vmatprep.mubr.msk.f32.mxu1 %vm2749_vm2, %v2750_v14 }
 0x32b   : > { %2311 = vmatprep.subr.mxu0 %v2750_v14 }
 0x32d   : > { %2304 = vmatmul.mubr.msk.f32.vlgmr.msra.gmra.mrb[0].mxu0 %vm914_vm5, %v1080_v36  ;;  %v1251_v37 = vpop.permute.xlu1 %1250 }
 0x32e   : > { %2312 = vmatpush3.xpose.msk.msra.mxu0 %vm914_vm5, %v1251_v37  ;;  %2313 = vmatprep.mubr.msk.f32.mxu0 %vm2749_vm2, %v2750_v14 }
 0x32f   : > { %2321 = vmatprep.subr.mxu0 %v2750_v14 }
 0x331   : > { %v1249_v38 = vpop.permute.xlu1 %1248 }
 0x332   : > { %2314 = vmatmul.mubr.msk.f32.vlgmr.msra.gmra.mrb[2].mxu0 %vm914_vm5, %v1249_v38 }
 0x333   : > { %2323 = vmatprep.mubr.msk.f32.mxu0 %vm2749_vm2, %v2750_v14 }
 0x335   : > { %v1420_v39 = vpop.permute.xlu1 %1419 }
 0x336   : > { %2322 = vmatpush3.xpose.msk.msra.mxu0 %vm914_vm5, %v1420_v39 }
 0x337   : > { %2378 = vmatprep.subr.bf16.mxu0 %v2748_v11 }
 0x339   : > { %v1418_v40 = vpop.permute.xlu1 %1417 }
 0x33a   : > { %2324 = vmatmul.mubr.msk.f32.vlgmr.msra.gmra.mrb[4].mxu0 %vm914_vm5, %v1418_v40  ;;  %v1603_v40 = vld [vmem:[%s3107_s25] sm:$0xff] }
 0x33b   : > { %2339 = vmatprep.mubr.msk.f32.mxu0 %vm2749_vm2, %v2750_v14 }
 0x3fc   : > { %v985_v41 = vpop.f32.mrb[2].mxu1 }
 0x3fd   : > { %v989_v43 = vmul.f32 0.35355338, %v985_v41  ;;  %v2295_v44 = vpop.f32.mrb[3].mxu1  ;;  %v1604_v41 = vld [vmem:[%s3107_s25 + $0x8] sm:$0xff] }
 0x3ff   : > { %v991_v45 = vadd.f32 %v990_v42, %v989_v43  ;;  %v2379_v42 = vpack.c.bf16 %v1604_v41, %v1603_v40 }
 0x400   : > { %v1153_v46 = vpop.f32.mrb[0].mxu0 }
 0x401   : > { %v1157_v48 = vmul.f32 0.35355338, %v1153_v46  ;;  %v2305_v49 = vpop.f32.mrb[1].mxu0  ;;  %v992_v50 = vsel %vm914_vm5, %v991_v45, -inf  ;;  %2380 = vmatpush3.bf16.msra.mxu0 %v2379_v42  ;;  %v1606_v46 = vld [vmem:[%s3107_s25 + $0x18] sm:$0xff] }
 0x402   : > { %993 = vmax.xlane.f32.xlu1 %v992_v50  ;;  %2381 = vmatprep.subr.bf16.mxu0 %v2748_v11 }
 0x403   : > { %v1160_v51 = vadd.f32 %v2210_v47, %v1157_v48 }
 0x405   : > { %v1322_v52 = vpop.f32.mrb[2].mxu0  ;;  %v1161_v53 = vsel %vm914_vm5, %v1160_v51, -inf }
 0x406   : > { %v1326_v55 = vmul.f32 0.35355338, %v1322_v52  ;;  %1162 = vmax.xlane.f32.xlu0 %v1161_v53  ;;  %v2315_v56 = vpop.f32.mrb[3].mxu0 }
 0x408   : > { %v1329_v57 = vadd.f32 %v2214_v54, %v1326_v55 }
 0x40a   : > { %v1330_v58 = vsel %vm914_vm5, %v1329_v57, -inf }
 0x40b   : > { %1331 = vmax.xlane.f32.xlu1 %v1330_v58 }
 0x40d   : > { %v1491_v59 = vpop.f32.mrb[4].mxu0 }
 0x40e   : > { %v1495_v61 = vmul.f32 0.35355338, %v1491_v59  ;;  %v2325_v62 = vpop.f32.mrb[5].mxu0 }
 0x410   : > { %v1498_v63 = vadd.f32 %v2218_v60, %v1495_v61  ;;  %v2220_v60 = vld [vmem:[%s3474_s26] ss:$0 sm:$0xff] }
 0x412   : > { %v1499_v0 = vsel %vm914_vm5, %v1498_v63, -inf }
 0x413   : > { %1500 = vmax.xlane.f32.xlu0 %v1499_v0 }
 0x41c   : > { %1003 = vrot.lane.b32.xlu1 %v3177_v32, %s2758_s18 }
 0x48f   : > { %v994_v2 = vpop.xlane.xlu1 %993 }
 0x490   : > { %v995_v3 = vsub.f32 %v991_v45, %v994_v2  ;;  %v1605_v45 = vld [vmem:[%s3107_s25 + $0x10] sm:$0xff]  ;;  %s3472_s25 = sld [smem:[#allocation27_spill]] }
 0x491   : > { %v2382_v47 = vpack.c.bf16 %v1606_v46, %v1605_v45 }
 0x492   : > { %v996_v4 = vmul.f32 1.442695, %v995_v3 }
 0x493   : > { %v1163_v5 = vpop.xlane.xlu0 %1162  ;;  %2383 = vmatpush3.bf16.msra.mxu0 %v2382_v47 }
 0x494   : > { %2532 = vpow2.f32 %v996_v4  ;;  %v1164_v6 = vsub.f32 %v1160_v51, %v1163_v5  ;;  %2390 = vmatprep.subr.bf16.mxu0 %v2748_v11 }
 0x496   : > { %v1165_v7 = vmul.f32 1.442695, %v1164_v6 }
 0x498   : > { %2534 = vpow2.f32 %v1165_v7  ;;  %v1332_v8 = vpop.xlane.xlu1 %1331  ;;  %v1724_v7 = vld [vmem:[%s3472_s25] sm:$0xff] }
 0x499   : > { %v1333_v9 = vsub.f32 %v1329_v57, %v1332_v8  ;;  %v1725_v8 = vld [vmem:[%s3472_s25 + $0x8] sm:$0xff] }
 0x49b   : > { %v1334_v10 = vmul.f32 1.442695, %v1333_v9  ;;  %v2385_v9 = vpack.c.bf16 %v1725_v8, %v1724_v7 }
 0x49c   : > { %v1004_v12 = vpop.permute.xlu1 %1003 }
 0x49d   : > { %2536 = vpow2.f32 %v1334_v10  ;;  %2297 = vmatpush3.msra.mxu1 %v1004_v12  ;;  %v1727_v10 = vld [vmem:[%s3472_s25 + $0x18] sm:$0xff] }
 0x49e   : > { %v2533_v13 = vpop.eup %2532  ;;  %2306 = vmatprep.subr.mxu1 %v2750_v14 }
 0x49f   : > { %v998_v15 = vsel %vm914_vm5, %v2533_v13, 0.0 }
 0x4a0   : > { %v1501_v16 = vpop.xlane.xlu0 %1500  ;;  %999 = vadd.xlane.f32.xlu1 %v998_v15  ;;  %v1810_v15 = vld [vmem:[%s3129_s7 + $0x8] sm:$0xff] }
 0x4a1   : > { %v1502_v17 = vsub.f32 %v1498_v63, %v1501_v16  ;;  %v1811_v16 = vld [vmem:[%s3129_s7 + $0x10] sm:$0xff] }
 0x4a2   : > { %v2535_v18 = vpop.eup %2534 }
 0x4a3   : > { %v1503_v19 = vmul.f32 1.442695, %v1502_v17  ;;  %v1167_v20 = vsel %vm914_vm5, %v2535_v18, 0.0 }
 0x4a4   : > { %1168 = vadd.xlane.f32.xlu0 %v1167_v20  ;;  %v1813_v20 = vld [vmem:[%s3129_s7 + $0x20] sm:$0xff] }
 0x4a5   : > { %2538 = vpow2.f32 %v1503_v19 }
 0x4a7   : > { %v2537_v21 = vpop.eup %2536 }
 0x4a8   : > { %v1336_v22 = vsel %vm914_vm5, %v2537_v21, 0.0 }
 0x4a9   : > { %1337 = vadd.xlane.f32.xlu1 %v1336_v22 }
 0x4af   : > { %v2539_v23 = vpop.eup %2538 }
 0x4b0   : > { %v1505_v24 = vsel %vm914_vm5, %v2539_v23, 0.0 }
 0x4b1   : > { %1506 = vadd.xlane.f32.xlu0 %v1505_v24 }
 0x4ba   : > { %1341 = vrot.lane.b32.xlu1 %v3177_v32, %s2759_s16 }
 0x4be   : > { %1510 = vrot.lane.b32.xlu1 %v3177_v32, %s2760_s4 }
 0x4c7   : > { %1172 = vrot.lane.b32.xlu0 %v3177_v32, %s2761_s28  ;;  %s3480_s28 = sld [smem:[#allocation40_spill]] (!%p2228_p10) }
 0x52d   : > { %v1000_v25 = vpop.xlane.xlu1 %999 }
 0x52e   : > { %2540 = vrcp.f32 %v1000_v25 }
 0x531   : > { %v1169_v26 = vpop.xlane.xlu0 %1168 }
 0x532   : > { %2542 = vrcp.f32 %v1169_v26 }
 0x536   : > { %v1338_v27 = vpop.xlane.xlu1 %1337 }
 0x537   : > { %2544 = vrcp.f32 %v1338_v27 }
 0x538   : > { %v2541_v28 = vpop.eup %2540 }
 0x539   : > { %v1002_v29 = vmul.f32 %v2541_v28, %v2533_v13  ;;  %v1809_v13 = vld [vmem:[%s3129_s7] sm:$0xff] }
 0x53a   : > { %v1342_v34 = vpop.permute.xlu1 %1341  ;;  %v2391_v17 = vpack.c.bf16 %v1810_v15, %v1809_v13 }
 0x53b   : > { %2299 = vmatmul.mubr.msk.f32.vlgmr.msra.gmra.mrb[4].mxu1 %vm914_vm5, %v1002_v29 }
 0x53c   : > { %2308 = vmatprep.mubr.msk.f32.mxu1 %vm2749_vm2, %v2750_v14  ;;  %v2543_v31 = vpop.eup %2542 }
 0x53d   : > { %v1171_v33 = vmul.f32 %v2543_v31, %v2535_v18  ;;  %v1812_v18 = vld [vmem:[%s3129_s7 + $0x18] sm:$0xff] }
 0x53e   : > { %v1507_v30 = vpop.xlane.xlu0 %1506  ;;  %v1511_v37 = vpop.permute.xlu1 %1510  ;;  %v2394_v19 = vpack.c.bf16 %v1812_v18, %v1811_v16 }
 0x53f   : > { %2546 = vrcp.f32 %v1507_v30 }
 0x541   : > { %v2545_v32 = vpop.eup %2544 }
 0x542   : > { %v1173_v35 = vpop.permute.xlu0 %1172  ;;  %v1340_v36 = vmul.f32 %v2545_v32, %v2537_v21  ;;  %v1814_v21 = vld [vmem:[%s3129_s7 + $0x28] sm:$0xff] }
 0x543   : > { %2307 = vmatpush3.msra.mxu1 %v1173_v35  ;;  %v2397_v22 = vpack.c.bf16 %v1814_v21, %v1813_v20 }
 0x544   : > { %2309 = vmatmul.mubr.msk.f32.vlgmr.msra.gmra.mrb[6].mxu1 %vm914_vm5, %v1171_v33  ;;  %2316 = vmatprep.subr.mxu1 %v2750_v14 }
 0x545   : > { %2317 = vmatpush3.msra.mxu1 %v1342_v34  ;;  %2318 = vmatprep.mubr.msk.f32.mxu1 %vm2749_vm2, %v2750_v14  ;;  %v2223_v34 = vld [vmem:[%s769_s22] ss:$0 sm:$0xff] }
 0x546   : > { %2326 = vmatprep.subr.mxu1 %v2750_v14 }
 0x548   : > { %2319 = vmatmul.mubr.msk.f32.vlgmr.msra.gmra.mrb[8].mxu1 %vm914_vm5, %v1340_v36  ;;  %v1815_v36 = vld [vmem:[%s3129_s7 + $0x30] sm:$0xff] }
 0x549   : > { %v2547_v38 = vpop.eup %2546  ;;  %2327 = vmatpush3.msra.mxu1 %v1511_v37  ;;  %2328 = vmatprep.mubr.msk.f32.mxu1 %vm2749_vm2, %v2750_v14  ;;  %v1816_v37 = vld [vmem:[%s3129_s7 + $0x38] sm:$0xff] }
 0x54a   : > { %v1509_v39 = vmul.f32 %v2547_v38, %v2539_v23  ;;  %2384 = vmatprep.subr.bf16.mxu1 %v2748_v11  ;;  %v2400_v38 = vpack.c.bf16 %v1816_v37, %v1815_v36 }
 0x54c   : > { %2329 = vmatmul.mubr.msk.f32.vlgmr.msra.gmra.mrb[10].mxu1 %vm914_vm5, %v1509_v39  ;;  %v2224_v39 = vld [vmem:[%s772_s19] ss:$0 sm:$0xff]  ;;  %s3479_s19 = sld [smem:[#allocation39_spill]] (!%p2228_p10) }
 0x54d   : > { %2350 = vmatprep.mubr.msk.f32.mxu1 %vm2749_vm2, %v2750_v14  ;;  %2386 = vmatpush3.bf16.msra.mxu1 %v2385_v9 }
 0x54e   : > { %2387 = vmatprep.subr.bf16.mxu1 %v2748_v11 }
 0x60e   : > { %v1075_v43 = vpop.f32.mrb[4].mxu1 }
 0x60f   : > { %v2300_v44 = vpop.f32.mrb[5].mxu1 }
 0x610   : > { %v2226_v44 = vld [vmem:[%s780_s0] ss:$0 sm:$0xff] }
 0x617   : > { %v1244_v48 = vpop.f32.mrb[6].mxu1 }
 0x618   : > { %1587 = vrot.lane.b32.xlu0 %v1244_v48, %s2762_s29  ;;  %v2310_v49 = vpop.f32.mrb[7].mxu1 }
 0x61b   : > { %v1413_v50 = vpop.f32.mrb[8].mxu1 }
 0x61c   : > { %1591 = vrot.lane.b32.xlu1 %v1413_v50, %s2763_s24  ;;  %v2320_v51 = vpop.f32.mrb[9].mxu1 }
 0x61f   : > { %v1582_v52 = vpop.f32.mrb[10].mxu1 }
 0x620   : > { %1595 = vrot.lane.b32.xlu0 %v1582_v52, %s2764_s14  ;;  %v2330_v53 = vpop.f32.mrb[11].mxu1 }
 0x68a   : > { %v1588_v54 = vpop.permute.xlu0 %1587 }
 0x68b   : > { %v1598_v56 = vsel %vm914_vm5, %v1075_v43, %v1588_v54 }
 0x68e   : > { %v1592_v55 = vpop.permute.xlu1 %1591 }
 0x68f   : > { %v1600_v57 = vsel %vm1599_vm6, %v1598_v56, %v1592_v55 }
 0x692   : > { %v1596_v58 = vpop.permute.xlu0 %1595 }
 0x693   : > { %v1602_v59 = vsel %vm1601_vm7, %v1600_v57, %v1596_v58 }
 0x694   : > { %2340 = vmatmul.mubr.msk.f32.vlgmr.msra.gmra.mrb[6].mxu0 %vm791_vm1, %v1602_v59 }
 0x695   : > { %2369 = vmatprep.mubr.msk.f32.mxu0 %vm2749_vm2, %v2750_v14  ;;  %2392 = vmatpush3.bf16.msra.mxu0 %v2391_v17 }
 0x696   : > { %2393 = vmatprep.subr.bf16.mxu0 %v2748_v11 }
 0x699   : > { %2395 = vmatpush3.bf16.msra.mxu0 %v2394_v19 }
 0x69a   : > { %2396 = vmatprep.subr.bf16.mxu0 %v2748_v11 }
 0x69d   : > { %2398 = vmatpush3.bf16.msra.mxu0 %v2397_v22 }
 0x69e   : > { %2399 = vmatprep.subr.bf16.mxu0 %v2748_v11  ;;  %v2222_v11 = vld [vmem:[%s766_s23] ss:$0 sm:$0xff] }
 0x6a1   : > { %2401 = vmatpush3.bf16.msra.mxu0 %v2400_v38 }
 0x767   : > { %v1683_v61 = vpop.f32.mrb[6].mxu0 }
 0x768   : > { %v1684_v62 = vadd.f32 %v2220_v60, %v1683_v61  ;;  %v2341_v63 = vpop.f32.mrb[7].mxu0 }
 0x769   : > { %v2229_v63 = vld [vmem:[%s3479_s19] ss:$0 sm:$0xff] (!%p2228_p10) }
 0x76a   : > { %v3255_v0 = vadd.f32 %v1684_v62, %v3141_v1  ;;  %v1726_v1 = vld [vmem:[%s3472_s25 + $0x10] sm:$0xff] }
 0x76b   : > { %v2388_v12 = vpack.c.bf16 %v1727_v10, %v1726_v1 }
 0x76c   : > { %v1690_v2 = vsel %vm791_vm1, %v3255_v0, 0.0 }
 0x76d   : > { %1691 = vadd.xlane.f32.xlu1 %v1690_v2  ;;  %2389 = vmatpush3.bf16.msra.mxu1 %v2388_v12 }
 0x7fa   : > { %v1692_v3 = vpop.xlane.xlu1 %1691 }
 0x7fb   : > { %v1693_v14 = vmul.f32 0.03125, %v1692_v3  ;;  %v2230_v3 = vld [vmem:[%s3480_s28] ss:$0 sm:$0xff] (!%p2228_p10) }
 0x7fd   : > { %v1694_v4 = vsub.f32 %v3255_v0, %v1693_v14 }
 0x7ff   : > { %v1695_v5 = vmul.f32 %v1694_v4, %v1694_v4  ;;  %v1715_v31 = vmul.f32 %v2222_v11, %v1694_v4 }
 0x801   : > { %v1696_v6 = vsel %vm791_vm1, %v1695_v5, 0.0 }
 0x802   : > { %1697 = vadd.xlane.f32.xlu0 %v1696_v6 }
 0x88f   : > { %v1698_v23 = vpop.xlane.xlu0 %1697 }
 0x890   : > { %v1699_v24 = vmul.f32 0.032258064, %v1698_v23 }
 0x892   : > { %2548 = vrsqrt.f32 %v1699_v24  ;;  %vm1702_vm8 = vcmp.eq.f32.partialorder %v1699_v24, inf  ;;  %v1705_v27 = vand.u32 2147483648, %v1699_v24  ;;  %vm1704_vm9 = vcmp.eq.f32.partialorder %v1699_v24, 0.0 }
 0x89c   : > { %v2549_v25 = vpop.eup %2548 }
 0x89d   : > { %v1701_v26 = vmul.f32 %v2549_v25, %v1699_v24 }
 0x89f   : > { %v1703_v28 = vsel %vm1702_vm8, %v1699_v24, %v1701_v26 }
 0x8a0   : > { %v1706_v29 = vsel %vm1704_vm9, %v1705_v27, %v1703_v28 }
 0x8a1   : > { %v1707_v30 = vadd.f32 1e-06, %v1706_v29 }
 0x8a3   : > { %2550 = vrcp.f32 %v1707_v30 }
 0x8ad   : > { %v2551_v33 = vpop.eup %2550 }
 0x8ae   : > { %v1716_v35 = vmul.f32 %v2551_v33, %v1715_v31 }
 0x8b0   : > { %v1723_v32 = vadd.f32 %v2223_v34, %v1716_v35 }
 0x8b2   : > { %2351 = vmatmul.mubr.msk.f32.vlgmr.msra.gmra.mrb[12].mxu1 %vm791_vm1, %v1723_v32 }
 0x985   : > { %v1804_v40 = vpop.f32.mrb[12].mxu1 }
 0x986   : > { %v1805_v41 = vadd.f32 %v2224_v39, %v1804_v40  ;;  %v2352_v42 = vpop.f32.mrb[13].mxu1 }
 0x988   : > { %v1808_v43 = vmax.f32 %v1805_v41, 0.0 }
 0x98a   : > { %2370 = vmatmul.mubr.msk.f32.vlgmr.msra.gmra.mrb[8].mxu0 %vm1824_vm10, %v1808_v43 }
 0xa5c   : > { %1903 = sbr.rel (%p2228_p10) target bundleno = 2985 (0xba9), region = 100 }
 0xa5d   : > { %v1894_v45 = vpop.f32.mrb[8].mxu0 }
 0xa5e   : > { %v1895_v46 = vadd.f32 %v2226_v44, %v1894_v45  ;;  %v2371_v47 = vpop.f32.mrb[9].mxu0 }
 0xa60   : > { %v1898_v48 = vadd.f32 %v1895_v46, %v3255_v0 }
 0xa62   : > { %1899 = vst.msk [vmem:[#allocation2] sm:$0xff] %vm791_vm1, %v1898_v48  ;;  %v1906_v49 = vsel (!%p2228_p10), %vm791_vm1, %v1898_v48, 0.0 }
 0xa63   : > { %1907 = vadd.xlane.f32.xlu0 %v1906_v49 }
 0xaf0   : > { %v1908_v50 = vpop.xlane.xlu0 %1907 }
 0xaf1   : > { %v1909_v51 = vmul.f32 0.03125, %v1908_v50 }
 0xaf3   : > { %v1910_v52 = vsub.f32 %v1898_v48, %v1909_v51 }
 0xaf5   : > { %v1911_v53 = vmul.f32 %v1910_v52, %v1910_v52  ;;  %v1931_v0 = vmul.f32 %v2229_v63, %v1910_v52 }
 0xaf7   : > { %v1912_v54 = vsel %vm791_vm1, %v1911_v53, 0.0 }
 0xaf8   : > { %1913 = vadd.xlane.f32.xlu0 %v1912_v54 }
 0xb85   : > { %v1914_v55 = vpop.xlane.xlu0 %1913 }
 0xb86   : > { %v1915_v56 = vmul.f32 0.032258064, %v1914_v55 }
 0xb88   : > { %2552 = vrsqrt.f32 %v1915_v56  ;;  %vm1918_vm11 = vcmp.eq.f32.partialorder %v1915_v56, inf  ;;  %v1921_v59 = vand.u32 2147483648, %v1915_v56  ;;  %vm1920_vm12 = vcmp.eq.f32.partialorder %v1915_v56, 0.0 }
 0xb92   : > { %v2553_v57 = vpop.eup %2552 }
 0xb93   : > { %v1917_v58 = vmul.f32 %v2553_v57, %v1915_v56 }
 0xb95   : > { %v1919_v60 = vsel %vm1918_vm11, %v1915_v56, %v1917_v58 }
 0xb96   : > { %v1922_v61 = vsel %vm1920_vm12, %v1921_v59, %v1919_v60 }
 0xb97   : > { %v1923_v62 = vadd.f32 1e-06, %v1922_v61 }
 0xb99   : > { %2554 = vrcp.f32 %v1923_v62 }
 0xba3   : > { %v2555_v2 = vpop.eup %2554 }
 0xba4   : > { %v1932_v14 = vmul.f32 %v2555_v2, %v1931_v0 }
 0xba6   : > { %v1939_v4 = vadd.f32 %v2230_v3, %v1932_v14 }
 0xba8   : > { %1940 = vst.msk [vmem:[%s3137_s6] sm:$0xff] %vm791_vm1, %v1939_v4 }
 0xba9 PF: > { %s3481_s29 = sld [smem:[#allocation17_spill]]  ;;  %s3482_s24 = sld [smem:[#allocation21_spill]] }
 0xbaa   : > { %s3483_s10 = sld [smem:[#allocation41_spill]]  ;;  %s1955_s26 = sshll.u32 %s3137_s6, 4  ;;  %s1956_s26 = int_to_ptr.vmem [resolvable:$true] %s1955_s26 }
 0xbab   : > { %s1942_s15 = scalar_lea.sflag [#allocation5], %s3056_s13  ;;  %s2616_s20 = scalar_lea.vmem %s1956_s26, 128 }
 0xbac   : > { %p2617_p0 = scmp.ne.s32.totalorder %s1956_s26, %s2616_s20  ;;  %s2765_s1 = smov [#allocation8]  }
 0xbad   : > { %s2620_s21 = sshll.u32 %s2765_s1, 4  ;;  %s2621_s21 = int_to_ptr.vmem [resolvable:$false] %s2620_s21 }
 0xbae   : > { %s2622_s8 = scalar_lea.vmem %s2621_s21, 256  ;;  %p2623_p4 = scmp.lt.s32.totalorder %s1956_s26, %s2621_s21 }
 0xbaf   : > { %s2232_s14 = sshll.u32 %s3481_s29, 7  ;;  %p3484_p7 = scmp.ne.s32.totalorder %s3482_s24, 0 }
 0xbb0   : > { %s3315_s30 = scalar_lea.hbm %s3483_s10, %s2232_s14  ;;  %p2624_p11 = scmp.lt.s32.totalorder %s2622_s8, %s2616_s20 }
 0xbb1   : > { %p2618_p9 = pnand %p2617_p0, %p3484_p7 }
 0xbb2   : > { %p2625_p3 = por %p2624_p11, %p2623_p4 }
 0xbb3   : > { %p2619_p1 = pneg %p2618_p9 }
 0xbb5   : > { %p2626_p12 = pnand %p2625_p3, %p2619_p1 }
 0xbb7   : > { %2629 = shalt.err (!%p2626_p12)
}
 0xbb8   : > { %s2630_s13 = scalar_lea.hbm %s3315_s30, 128  ;;  %s2634_s17 = scalar_lea.hbm %s3483_s10, 256 }
 0xbb9   : > { %p2631_p5 = scmp.ne.s32.totalorder %s3315_s30, %s2630_s13  ;;  %p2635_p8 = scmp.lt.u32.totalorder %s3315_s30, %s3483_s10 }
 0xbba   : > { %p2636_p13 = scmp.lt.u32.totalorder %s2634_s17, %s2630_s13  ;;  %p2638_p0 = scmp.lt.u32.totalorder %s2630_s13, %s3315_s30 }
 0xbbb   : > { %p2632_p2 = pnand %p2631_p5, %p3484_p7 }
 0xbbc   : > { %p2637_p10 = por %p2636_p13, %p2635_p8 }
 0xbbd   : > { %p2633_p6 = pneg %p2632_p2 }
 0xbbe   : > { %p2639_p9 = por %p2638_p0, %p2637_p10 }
 0xbc0   : > { %p2640_p1 = pnand %p2639_p9, %p2633_p6 }
 0xbc2   : > { %2643 = shalt.err (!%p2640_p1)
}
 0xbc3   : > { %2406 = dma.vmem_to_hbm [thread:$0]  (%p3484_p7), %s1956_s26, 128, %s3315_s30, %s1942_s15  }
 0xbc4 PF: > { %s3485_s22 = sld [smem:[#allocation20_spill]]  ;;  %s3486_s23 = sld [smem:[#allocation14_spill]] }
 0xbc5   : > { %s3487_s4 = sld [smem:[#allocation22_spill]] }
 0xbca   : > { %p2420_p4 = scmp.ge.s32.totalorder %s3485_s22, 2  ;;  %s1967_s27 = sand.u32 1, %s3486_s23  }
 0xbcb   : > { %p3488_p11 = scmp.ne.s32.totalorder %s3487_s4, 0  ;;  %s1968_s12 = scalar_lea.sflag [#allocation5], %s1967_s27 }
 0xbcd   : > { %p2416_p3 = pnand %p2420_p4, %p3488_p11 }
 0xbcf   : > { %2697 = dma.done.wait (!%p2416_p3), %s1968_s12, 128  }
 0xbd0   : > { %2699 = vsyncadd (!%p2416_p3), %s1968_s12, 4294967168  ;;  %s35_s0 = sadd.s32 1, %s3485_s22   ;;  %s3489_s21 = sld [smem:[#allocation12_spill]] }
 0xbd1   : > { %p32_p12 = scmp.ge.s32.totalorder %s35_s0, 6   ;;  %s3490_s22 = sld [smem:[#allocation13_spill]] }
 0xbd2   : > { %s3491_s23 = sld [smem:[#allocation25_spill]]  ;;  %s3492_s24 = sld [smem:[#allocation15_spill]] }
 0xbd3   : > { %s3493_s25 = sld [smem:[#allocation16_spill]]  ;;  %s3494_s26 = sld [smem:[#allocation26_spill]] }
 0xbd4   : > { %s3495_s27 = sld [smem:[#allocation18_spill]]  ;;  %s3496_s28 = sld [smem:[#allocation19_spill]] }
 0xbd5   : > { %s3497_s29 = sld [smem:[#allocation23_spill]]  ;;  %s3498_s30 = sld [smem:[#allocation24_spill]] }
 0xbd6   :  { %34 = sbr.rel (!%p32_p12) target bundleno = 26 (0x1a), region = 189 }
 0xbdd   :  { %1973 = vsyncpa [#allocation4], 1 }
 0xbde   :  { %1975 = vsyncpa [#allocation4 + $0x1], 1 }
 0xbdf   :  { %1976 = vsyncpa [#allocation7], 1 }
 0xbe0   :  { %1978 = vsyncpa [#allocation7 + $0x1], 1 }
 0xbe1   :  { %1979 = vsyncpa [#allocation5], 1 }
 0xbe2   :  { %1981 = vsyncpa [#allocation5 + $0x1], 1 }

</bundles_post_ra>
